<compile_context>
chip_gen: v5e
topology: v5e:2x2
jax: 0.10.0
libtpu: 0.0.40
codegen_flags: <defaults>
</compile_context>

<pallas_src>
from functools import partial

import jax
import jax.numpy as jnp
from jax import lax
from jax.experimental import pallas as pl
from jax.experimental.pallas import tpu as pltpu


_BN_EPS = 1e-5


# ------------------------------ fused kernel --------------------------------


def _bottleneck_kernel(x_ref, idx_ref, w1t_ref, w2m_ref, w3t_ref,
                       s1_ref, b1_ref, s2_ref, b2_ref, s3_ref, b3_ref,
                       o_ref, col_ref, *, D, H, W):
    """Fused Bottleneck body (stride=1, no downsample), channel-major.

    x_ref   : (1, C, S)   input block (also the residual), S = D*H*W
    idx_ref : (3, S)      int32 rows = (d, h, w) index of each flat position
    w1t_ref : (P, C)      conv1 weight, transposed
    w2m_ref : (P, 27*P)   conv2 weight laid out as (out, tap*P + in)
    w3t_ref : (C, P)      conv3 weight, transposed
    s*/b*   : (Cout, 1)   folded BatchNorm scale / bias
    o_ref   : (1, C, S)   output block
    col_ref : (27*P, S)   VMEM scratch: im2col slab for the 3x3x3 conv
    """
    HW = H * W
    S = D * HW
    P = w1t_ref.shape[0]

    x = x_ref[0]                                              # (C, S)

    # ---- conv1 (1x1x1) + bn1 + relu : (P, C) @ (C, S) -> (P, S) ----------
    y1 = jnp.dot(w1t_ref[...], x, preferred_element_type=jnp.float32)
    y1 = jnp.maximum(y1 * s1_ref[...] + b1_ref[...], 0.0)

    # ---- build the im2col slab for the 3x3x3 conv -------------------------
    # Tap (kd,kh,kw) reads flat position s + sigma, sigma = dd*HW + dh*W + dw
    # with (dd,dh,dw) in {-1,0,1}.  Reads whose h/w/d index falls outside the
    # volume are zeroed with masks (= zero padding); a zero guard band of
    # `pad` lanes on both sides keeps every static lane slice in bounds.
    pad = ((HW + W + 1 + 127) // 128) * 128
    zpad = jnp.zeros((P, pad), jnp.float32)
    y1p = jnp.concatenate([zpad, y1, zpad], axis=1)           # (P, S + 2*pad)

    d_idx = idx_ref[0:1, :]                                   # (1, S) int32
    h_idx = idx_ref[1:2, :]
    w_idx = idx_ref[2:3, :]

    def axis_masks(idx, n):
        return {-1: jnp.where(idx >= 1, 1.0, 0.0),
                1: jnp.where(idx < n - 1, 1.0, 0.0)}

    md = axis_masks(d_idx, D)
    mh = axis_masks(h_idx, H)
    mw = axis_masks(w_idx, W)

    for kd in range(3):
        for kh in range(3):
            for kw in range(3):
                dd, dh, dw = kd - 1, kh - 1, kw - 1
                sigma = dd * HW + dh * W + dw
                tap = (kd * 3 + kh) * 3 + kw
                sl = y1p[:, pad + sigma:pad + sigma + S]      # static lane shift
                m = None
                for masks, delta in ((md, dd), (mh, dh), (mw, dw)):
                    if delta != 0:
                        m = masks[delta] if m is None else m * masks[delta]
                col_ref[tap * P:(tap + 1) * P, :] = sl if m is None else sl * m

    # ---- conv2 (3x3x3) + bn2 + relu : one K = 27*P matmul -----------------
    o2 = jnp.dot(w2m_ref[...], col_ref[...],
                 preferred_element_type=jnp.float32)          # (P, S)
    o2 = jnp.maximum(o2 * s2_ref[...] + b2_ref[...], 0.0)

    # ---- conv3 (1x1x1) + bn3 + residual + relu -----------------------------
    o3 = jnp.dot(w3t_ref[...], o2, preferred_element_type=jnp.float32)
    o3 = o3 * s3_ref[...] + b3_ref[...] + x
    o_ref[0] = jnp.maximum(o3, 0.0).astype(o_ref.dtype)


# ----------------------------- module wrapper --------------------------------


def _fold_bn(bn):
    scale = bn["gamma"] * lax.rsqrt(bn["var"] + _BN_EPS)
    bias = bn["beta"] - bn["mean"] * scale
    return scale.reshape(-1, 1), bias.reshape(-1, 1)


def bottleneck_forward(x_ncdhw, params):
    """Bottleneck.forward with stride=1, downsample=None (inference BN)."""
    N, C, D, H, W = x_ncdhw.shape
    P = params["w1"].shape[1]
    S = D * H * W
    assert C == 4 * P, "residual add requires inplanes == planes * expansion"

    s1, b1 = _fold_bn(params["bn1"])          # (P, 1)
    s2, b2 = _fold_bn(params["bn2"])          # (P, 1)
    s3, b3 = _fold_bn(params["bn3"])          # (C, 1)

    x = x_ncdhw.reshape(N, C, S)              # channel-major; NO transpose

    w1t = params["w1"].T                                   # (P, C)
    w2m = params["w2"].reshape(27 * P, P).T                # (P, 27*P)
    w3t = params["w3"].T                                   # (C, P)

    pos = jnp.arange(S, dtype=jnp.int32)
    idx = jnp.stack([pos // (H * W), (pos // W) % H, pos % W])   # (3, S) i32

    kernel = partial(_bottleneck_kernel, D=D, H=H, W=W)
    out = pl.pallas_call(
        kernel,
        out_shape=jax.ShapeDtypeStruct((N, C, S), x.dtype),
        grid=(N,),
        in_specs=[
            pl.BlockSpec((1, C, S), lambda n: (n, 0, 0)),      # x (+ residual)
            pl.BlockSpec((3, S), lambda n: (0, 0)),            # (d,h,w) indices
            pl.BlockSpec((P, C), lambda n: (0, 0)),            # w1^T
            pl.BlockSpec((P, 27 * P), lambda n: (0, 0)),       # w2 (im2col form)
            pl.BlockSpec((C, P), lambda n: (0, 0)),            # w3^T
            pl.BlockSpec((P, 1), lambda n: (0, 0)),            # bn1 scale
            pl.BlockSpec((P, 1), lambda n: (0, 0)),            # bn1 bias
            pl.BlockSpec((P, 1), lambda n: (0, 0)),            # bn2 scale
            pl.BlockSpec((P, 1), lambda n: (0, 0)),            # bn2 bias
            pl.BlockSpec((C, 1), lambda n: (0, 0)),            # bn3 scale
            pl.BlockSpec((C, 1), lambda n: (0, 0)),            # bn3 bias
        ],
        out_specs=pl.BlockSpec((1, C, S), lambda n: (n, 0, 0)),
        scratch_shapes=[pltpu.VMEM((27 * P, S), jnp.float32)],
        compiler_params=pltpu.CompilerParams(
            dimension_semantics=("parallel",)),
    )(x, idx, w1t, w2m, w3t, s1, b1, s2, b2, s3, b3)
    return out.reshape(N, C, D, H, W)


# --------------------------- pure-JAX reference ------------------------------


def _bn_ref(x, bn):
    return (x - bn["mean"]) * (bn["gamma"] * lax.rsqrt(bn["var"] + _BN_EPS)) \
        + bn["beta"]


def bottleneck_reference(x_ncdhw, params):
    hi = lax.Precision.HIGHEST
    x = jnp.transpose(x_ncdhw, (0, 2, 3, 4, 1))
    o = jnp.einsum("ndhwc,cp->ndhwp", x, params["w1"], precision=hi)
    o = jax.nn.relu(_bn_ref(o, params["bn1"]))
    o = lax.conv_general_dilated(
        o, params["w2"], window_strides=(1, 1, 1), padding=[(1, 1)] * 3,
        dimension_numbers=("NDHWC", "DHWIO", "NDHWC"), precision=hi)
    o = jax.nn.relu(_bn_ref(o, params["bn2"]))
    o = jnp.einsum("ndhwp,pq->ndhwq", o, params["w3"], precision=hi)
    o = jax.nn.relu(_bn_ref(o, params["bn3"]) + x)
    return jnp.transpose(o, (0, 4, 1, 2, 3))


# --------------------------------- main ---------------------------------------

if __name__ == "__main__":
    key = jax.random.PRNGKey(0)
    keys = jax.random.split(key, 8)

    planes = 8
    inplanes = planes * 4          # expansion = 4 so the residual add is valid
    N, D, H, W = 2, 8, 8, 8

    x = jax.random.normal(keys[0], (N, inplanes, D, H, W), dtype=jnp.float32)

    def bn_params(k, c):
        k1, k2, k3, k4 = jax.random.split(k, 4)
        return dict(
            gamma=jax.random.uniform(k1, (c,), minval=0.5, maxval=1.5),
            beta=0.1 * jax.random.normal(k2, (c,)),
            mean=0.1 * jax.random.normal(k3, (c,)),
            var=jax.random.uniform(k4, (c,), minval=0.5, maxval=1.5),
        )

    params = dict(
        # conv weights stored channels-last friendly:
        # w1: (Cin, P), w2: (kD,kH,kW,Pin,Pout), w3: (P, 4P)
        w1=0.1 * jax.random.normal(keys[1], (inplanes, planes), jnp.float32),
        w2=0.1 * jax.random.normal(keys[2], (3, 3, 3, planes, planes),
                                   jnp.float32),
        w3=0.1 * jax.random.normal(keys[3], (planes, planes * 4), jnp.float32),
        bn1=bn_params(keys[4], planes),
        bn2=bn_params(keys[5], planes),
        bn3=bn_params(keys[6], planes * 4),
    )

    out = jax.block_until_ready(bottleneck_forward(x, params))
    ref = jax.block_until_ready(bottleneck_reference(x, params))

    assert out.shape == (N, inplanes, D, H, W), out.shape
    max_err = float(jnp.max(jnp.abs(out - ref)))
    assert max_err < 2e-3, f"max abs error too large: {max_err}"
    print("KERNEL_OK")
</pallas_src>

<mosaic_0001>
module attributes {stable_mosaic.version = 11 : i64} {
  func.func @_bottleneck_kernel(%arg0: i32, %arg1: memref<1x32x512xf32, #tpu.memory_space<vmem>>, %arg2: memref<3x512xi32, #tpu.memory_space<vmem>>, %arg3: memref<8x32xf32, #tpu.memory_space<vmem>>, %arg4: memref<8x216xf32, #tpu.memory_space<vmem>>, %arg5: memref<32x8xf32, #tpu.memory_space<vmem>>, %arg6: memref<8x1xf32, #tpu.memory_space<vmem>>, %arg7: memref<8x1xf32, #tpu.memory_space<vmem>>, %arg8: memref<8x1xf32, #tpu.memory_space<vmem>>, %arg9: memref<8x1xf32, #tpu.memory_space<vmem>>, %arg10: memref<32x1xf32, #tpu.memory_space<vmem>>, %arg11: memref<32x1xf32, #tpu.memory_space<vmem>>, %arg12: memref<1x32x512xf32, #tpu.memory_space<vmem>>, %arg13: memref<216x512xf32, #tpu.memory_space<vmem>>) attributes {dimension_semantics = [#tpu.dimension_semantics<parallel>], iteration_bounds = array<i64: 2>, scalar_prefetch = 0 : i64, scratch_operands = 1 : i64, tpu.core_type = #tpu.core_type<tc>, window_params = [{transform_indices = @transform_0, window_bounds = array<i64: 1, 32, 512>}, {pipeline_mode = #tpu.pipeline_mode<synchronous>, transform_indices = @transform_1, window_bounds = array<i64: 3, 512>}, {pipeline_mode = #tpu.pipeline_mode<synchronous>, transform_indices = @transform_2, window_bounds = array<i64: 8, 32>}, {pipeline_mode = #tpu.pipeline_mode<synchronous>, transform_indices = @transform_3, window_bounds = array<i64: 8, 216>}, {pipeline_mode = #tpu.pipeline_mode<synchronous>, transform_indices = @transform_4, window_bounds = array<i64: 32, 8>}, {pipeline_mode = #tpu.pipeline_mode<synchronous>, transform_indices = @transform_5, window_bounds = array<i64: 8, 1>}, {pipeline_mode = #tpu.pipeline_mode<synchronous>, transform_indices = @transform_6, window_bounds = array<i64: 8, 1>}, {pipeline_mode = #tpu.pipeline_mode<synchronous>, transform_indices = @transform_7, window_bounds = array<i64: 8, 1>}, {pipeline_mode = #tpu.pipeline_mode<synchronous>, transform_indices = @transform_8, window_bounds = array<i64: 8, 1>}, {pipeline_mode = #tpu.pipeline_mode<synchronous>, transform_indices = @transform_9, window_bounds = array<i64: 32, 1>}, {pipeline_mode = #tpu.pipeline_mode<synchronous>, transform_indices = @transform_10, window_bounds = array<i64: 32, 1>}, {transform_indices = @transform_11, window_bounds = array<i64: 1, 32, 512>}]} {
    %c0 = arith.constant 0 : index
    %c0_0 = arith.constant 0 : index
    %c0_1 = arith.constant 0 : index
    %0 = vector.load %arg1[%c0, %c0_0, %c0_1] : memref<1x32x512xf32, #tpu.memory_space<vmem>>, vector<1x32x512xf32>
    %1 = vector.shape_cast %0 : vector<1x32x512xf32> to vector<32x512xf32>
    %c0_2 = arith.constant 0 : index
    %c0_3 = arith.constant 0 : index
    %2 = vector.load %arg3[%c0_2, %c0_3] : memref<8x32xf32, #tpu.memory_space<vmem>>, vector<8x32xf32>
    %cst = arith.constant dense<0.000000e+00> : vector<8x512xf32>
    %3 = tpu.matmul %2, %1, %cst {dimension_numbers = #tpu.dot_dimension_numbers<[1], [0], [0], [1], [0, 0, 1, 1], [], []>} : vector<8x32xf32>, vector<32x512xf32>, vector<8x512xf32> -> vector<8x512xf32>
    %c0_4 = arith.constant 0 : index
    %c0_5 = arith.constant 0 : index
    %4 = vector.load %arg6[%c0_4, %c0_5] : memref<8x1xf32, #tpu.memory_space<vmem>>, vector<8x1xf32>
    %5 = vector.broadcast %4 : vector<8x1xf32> to vector<8x512xf32>
    %6 = arith.mulf %3, %5 : vector<8x512xf32>
    %c0_6 = arith.constant 0 : index
    %c0_7 = arith.constant 0 : index
    %7 = vector.load %arg7[%c0_6, %c0_7] : memref<8x1xf32, #tpu.memory_space<vmem>>, vector<8x1xf32>
    %8 = vector.broadcast %7 : vector<8x1xf32> to vector<8x512xf32>
    %9 = arith.addf %6, %8 : vector<8x512xf32>
    %cst_8 = arith.constant 0.000000e+00 : f32
    %10 = vector.broadcast %cst_8 : f32 to vector<8x512xf32>
    %11 = arith.maximumf %9, %10 : vector<8x512xf32>
    %cst_9 = arith.constant 0.000000e+00 : f32
    %12 = vector.broadcast %cst_9 : f32 to vector<8x128xf32>
    %13 = tpu.concatenate %12, %11, %12 in 1 : vector<8x128xf32>, vector<8x512xf32>, vector<8x128xf32> -> vector<8x768xf32>
    %c0_10 = arith.constant 0 : index
    %c0_11 = arith.constant 0 : index
    %14 = vector.load %arg2[%c0_10, %c0_11] : memref<3x512xi32, #tpu.memory_space<vmem>>, vector<1x512xi32>
    %c1 = arith.constant 1 : index
    %c0_12 = arith.constant 0 : index
    %15 = vector.load %arg2[%c1, %c0_12] : memref<3x512xi32, #tpu.memory_space<vmem>>, vector<1x512xi32>
    %c2 = arith.constant 2 : index
    %c0_13 = arith.constant 0 : index
    %16 = vector.load %arg2[%c2, %c0_13] : memref<3x512xi32, #tpu.memory_space<vmem>>, vector<1x512xi32>
    %c1_i32 = arith.constant 1 : i32
    %17 = vector.broadcast %c1_i32 : i32 to vector<1x512xi32>
    %18 = arith.cmpi sge, %14, %17 : vector<1x512xi32>
    %cst_14 = arith.constant 1.000000e+00 : f32
    %cst_15 = arith.constant 0.000000e+00 : f32
    %19 = vector.broadcast %cst_14 : f32 to vector<1x512xf32>
    %20 = vector.broadcast %cst_15 : f32 to vector<1x512xf32>
    %21 = arith.select %18, %19, %20 : vector<1x512xi1>, vector<1x512xf32>
    %c7_i32 = arith.constant 7 : i32
    %22 = vector.broadcast %c7_i32 : i32 to vector<1x512xi32>
    %23 = arith.cmpi slt, %14, %22 : vector<1x512xi32>
    %cst_16 = arith.constant 1.000000e+00 : f32
    %cst_17 = arith.constant 0.000000e+00 : f32
    %24 = vector.broadcast %cst_16 : f32 to vector<1x512xf32>
    %25 = vector.broadcast %cst_17 : f32 to vector<1x512xf32>
    %26 = arith.select %23, %24, %25 : vector<1x512xi1>, vector<1x512xf32>
    %c1_i32_18 = arith.constant 1 : i32
    %27 = vector.broadcast %c1_i32_18 : i32 to vector<1x512xi32>
    %28 = arith.cmpi sge, %15, %27 : vector<1x512xi32>
    %cst_19 = arith.constant 1.000000e+00 : f32
    %cst_20 = arith.constant 0.000000e+00 : f32
    %29 = vector.broadcast %cst_19 : f32 to vector<1x512xf32>
    %30 = vector.broadcast %cst_20 : f32 to vector<1x512xf32>
    %31 = arith.select %28, %29, %30 : vector<1x512xi1>, vector<1x512xf32>
    %c7_i32_21 = arith.constant 7 : i32
    %32 = vector.broadcast %c7_i32_21 : i32 to vector<1x512xi32>
    %33 = arith.cmpi slt, %15, %32 : vector<1x512xi32>
    %cst_22 = arith.constant 1.000000e+00 : f32
    %cst_23 = arith.constant 0.000000e+00 : f32
    %34 = vector.broadcast %cst_22 : f32 to vector<1x512xf32>
    %35 = vector.broadcast %cst_23 : f32 to vector<1x512xf32>
    %36 = arith.select %33, %34, %35 : vector<1x512xi1>, vector<1x512xf32>
    %c1_i32_24 = arith.constant 1 : i32
    %37 = vector.broadcast %c1_i32_24 : i32 to vector<1x512xi32>
    %38 = arith.cmpi sge, %16, %37 : vector<1x512xi32>
    %cst_25 = arith.constant 1.000000e+00 : f32
    %cst_26 = arith.constant 0.000000e+00 : f32
    %39 = vector.broadcast %cst_25 : f32 to vector<1x512xf32>
    %40 = vector.broadcast %cst_26 : f32 to vector<1x512xf32>
    %41 = arith.select %38, %39, %40 : vector<1x512xi1>, vector<1x512xf32>
    %c7_i32_27 = arith.constant 7 : i32
    %42 = vector.broadcast %c7_i32_27 : i32 to vector<1x512xi32>
    %43 = arith.cmpi slt, %16, %42 : vector<1x512xi32>
    %cst_28 = arith.constant 1.000000e+00 : f32
    %cst_29 = arith.constant 0.000000e+00 : f32
    %44 = vector.broadcast %cst_28 : f32 to vector<1x512xf32>
    %45 = vector.broadcast %cst_29 : f32 to vector<1x512xf32>
    %46 = arith.select %43, %44, %45 : vector<1x512xi1>, vector<1x512xf32>
    %47 = vector.extract_strided_slice %13 {offsets = [0, 55], sizes = [8, 512], strides = [1, 1]} : vector<8x768xf32> to vector<8x512xf32>
    %48 = arith.mulf %21, %31 : vector<1x512xf32>
    %49 = arith.mulf %48, %41 : vector<1x512xf32>
    %50 = vector.broadcast %49 : vector<1x512xf32> to vector<8x512xf32>
    %51 = arith.mulf %47, %50 : vector<8x512xf32>
    %c0_30 = arith.constant 0 : index
    %c0_31 = arith.constant 0 : index
    %52 = vector.load %arg13[%c0_30, %c0_31] : memref<216x512xf32, #tpu.memory_space<vmem>>, vector<8x512xf32>
    tpu.vector_store %arg13[%c0_30, %c0_31], %51 {strides = array<i32>} : memref<216x512xf32, #tpu.memory_space<vmem>>, vector<8x512xf32>,
    %53 = vector.extract_strided_slice %13 {offsets = [0, 56], sizes = [8, 512], strides = [1, 1]} : vector<8x768xf32> to vector<8x512xf32>
    %54 = arith.mulf %21, %31 : vector<1x512xf32>
    %55 = vector.broadcast %54 : vector<1x512xf32> to vector<8x512xf32>
    %56 = arith.mulf %53, %55 : vector<8x512xf32>
    %c8 = arith.constant 8 : index
    %c0_32 = arith.constant 0 : index
    %57 = vector.load %arg13[%c8, %c0_32] : memref<216x512xf32, #tpu.memory_space<vmem>>, vector<8x512xf32>
    tpu.vector_store %arg13[%c8, %c0_32], %56 {strides = array<i32>} : memref<216x512xf32, #tpu.memory_space<vmem>>, vector<8x512xf32>,
    %58 = vector.extract_strided_slice %13 {offsets = [0, 57], sizes = [8, 512], strides = [1, 1]} : vector<8x768xf32> to vector<8x512xf32>
    %59 = arith.mulf %21, %31 : vector<1x512xf32>
    %60 = arith.mulf %59, %46 : vector<1x512xf32>
    %61 = vector.broadcast %60 : vector<1x512xf32> to vector<8x512xf32>
    %62 = arith.mulf %58, %61 : vector<8x512xf32>
    %c16 = arith.constant 16 : index
    %c0_33 = arith.constant 0 : index
    %63 = vector.load %arg13[%c16, %c0_33] : memref<216x512xf32, #tpu.memory_space<vmem>>, vector<8x512xf32>
    tpu.vector_store %arg13[%c16, %c0_33], %62 {strides = array<i32>} : memref<216x512xf32, #tpu.memory_space<vmem>>, vector<8x512xf32>,
    %64 = vector.extract_strided_slice %13 {offsets = [0, 63], sizes = [8, 512], strides = [1, 1]} : vector<8x768xf32> to vector<8x512xf32>
    %65 = arith.mulf %21, %41 : vector<1x512xf32>
    %66 = vector.broadcast %65 : vector<1x512xf32> to vector<8x512xf32>
    %67 = arith.mulf %64, %66 : vector<8x512xf32>
    %c24 = arith.constant 24 : index
    %c0_34 = arith.constant 0 : index
    %68 = vector.load %arg13[%c24, %c0_34] : memref<216x512xf32, #tpu.memory_space<vmem>>, vector<8x512xf32>
    tpu.vector_store %arg13[%c24, %c0_34], %67 {strides = array<i32>} : memref<216x512xf32, #tpu.memory_space<vmem>>, vector<8x512xf32>,
    %69 = vector.extract_strided_slice %13 {offsets = [0, 64], sizes = [8, 512], strides = [1, 1]} : vector<8x768xf32> to vector<8x512xf32>
    %70 = vector.broadcast %21 : vector<1x512xf32> to vector<8x512xf32>
    %71 = arith.mulf %69, %70 : vector<8x512xf32>
    %c32 = arith.constant 32 : index
    %c0_35 = arith.constant 0 : index
    %72 = vector.load %arg13[%c32, %c0_35] : memref<216x512xf32, #tpu.memory_space<vmem>>, vector<8x512xf32>
    tpu.vector_store %arg13[%c32, %c0_35], %71 {strides = array<i32>} : memref<216x512xf32, #tpu.memory_space<vmem>>, vector<8x512xf32>,
    %73 = vector.extract_strided_slice %13 {offsets = [0, 65], sizes = [8, 512], strides = [1, 1]} : vector<8x768xf32> to vector<8x512xf32>
    %74 = arith.mulf %21, %46 : vector<1x512xf32>
    %75 = vector.broadcast %74 : vector<1x512xf32> to vector<8x512xf32>
    %76 = arith.mulf %73, %75 : vector<8x512xf32>
    %c40 = arith.constant 40 : index
    %c0_36 = arith.constant 0 : index
    %77 = vector.load %arg13[%c40, %c0_36] : memref<216x512xf32, #tpu.memory_space<vmem>>, vector<8x512xf32>
    tpu.vector_store %arg13[%c40, %c0_36], %76 {strides = array<i32>} : memref<216x512xf32, #tpu.memory_space<vmem>>, vector<8x512xf32>,
    %78 = vector.extract_strided_slice %13 {offsets = [0, 71], sizes = [8, 512], strides = [1, 1]} : vector<8x768xf32> to vector<8x512xf32>
    %79 = arith.mulf %21, %36 : vector<1x512xf32>
    %80 = arith.mulf %79, %41 : vector<1x512xf32>
    %81 = vector.broadcast %80 : vector<1x512xf32> to vector<8x512xf32>
    %82 = arith.mulf %78, %81 : vector<8x512xf32>
    %c48 = arith.constant 48 : index
    %c0_37 = arith.constant 0 : index
    %83 = vector.load %arg13[%c48, %c0_37] : memref<216x512xf32, #tpu.memory_space<vmem>>, vector<8x512xf32>
    tpu.vector_store %arg13[%c48, %c0_37], %82 {strides = array<i32>} : memref<216x512xf32, #tpu.memory_space<vmem>>, vector<8x512xf32>,
    %84 = vector.extract_strided_slice %13 {offsets = [0, 72], sizes = [8, 512], strides = [1, 1]} : vector<8x768xf32> to vector<8x512xf32>
    %85 = arith.mulf %21, %36 : vector<1x512xf32>
    %86 = vector.broadcast %85 : vector<1x512xf32> to vector<8x512xf32>
    %87 = arith.mulf %84, %86 : vector<8x512xf32>
    %c56 = arith.constant 56 : index
    %c0_38 = arith.constant 0 : index
    %88 = vector.load %arg13[%c56, %c0_38] : memref<216x512xf32, #tpu.memory_space<vmem>>, vector<8x512xf32>
    tpu.vector_store %arg13[%c56, %c0_38], %87 {strides = array<i32>} : memref<216x512xf32, #tpu.memory_space<vmem>>, vector<8x512xf32>,
    %89 = vector.extract_strided_slice %13 {offsets = [0, 73], sizes = [8, 512], strides = [1, 1]} : vector<8x768xf32> to vector<8x512xf32>
    %90 = arith.mulf %21, %36 : vector<1x512xf32>
    %91 = arith.mulf %90, %46 : vector<1x512xf32>
    %92 = vector.broadcast %91 : vector<1x512xf32> to vector<8x512xf32>
    %93 = arith.mulf %89, %92 : vector<8x512xf32>
    %c64 = arith.constant 64 : index
    %c0_39 = arith.constant 0 : index
    %94 = vector.load %arg13[%c64, %c0_39] : memref<216x512xf32, #tpu.memory_space<vmem>>, vector<8x512xf32>
    tpu.vector_store %arg13[%c64, %c0_39], %93 {strides = array<i32>} : memref<216x512xf32, #tpu.memory_space<vmem>>, vector<8x512xf32>,
    %95 = vector.extract_strided_slice %13 {offsets = [0, 119], sizes = [8, 512], strides = [1, 1]} : vector<8x768xf32> to vector<8x512xf32>
    %96 = arith.mulf %31, %41 : vector<1x512xf32>
    %97 = vector.broadcast %96 : vector<1x512xf32> to vector<8x512xf32>
    %98 = arith.mulf %95, %97 : vector<8x512xf32>
    %c72 = arith.constant 72 : index
    %c0_40 = arith.constant 0 : index
    %99 = vector.load %arg13[%c72, %c0_40] : memref<216x512xf32, #tpu.memory_space<vmem>>, vector<8x512xf32>
    tpu.vector_store %arg13[%c72, %c0_40], %98 {strides = array<i32>} : memref<216x512xf32, #tpu.memory_space<vmem>>, vector<8x512xf32>,
    %100 = vector.extract_strided_slice %13 {offsets = [0, 120], sizes = [8, 512], strides = [1, 1]} : vector<8x768xf32> to vector<8x512xf32>
    %101 = vector.broadcast %31 : vector<1x512xf32> to vector<8x512xf32>
    %102 = arith.mulf %100, %101 : vector<8x512xf32>
    %c80 = arith.constant 80 : index
    %c0_41 = arith.constant 0 : index
    %103 = vector.load %arg13[%c80, %c0_41] : memref<216x512xf32, #tpu.memory_space<vmem>>, vector<8x512xf32>
    tpu.vector_store %arg13[%c80, %c0_41], %102 {strides = array<i32>} : memref<216x512xf32, #tpu.memory_space<vmem>>, vector<8x512xf32>,
    %104 = vector.extract_strided_slice %13 {offsets = [0, 121], sizes = [8, 512], strides = [1, 1]} : vector<8x768xf32> to vector<8x512xf32>
    %105 = arith.mulf %31, %46 : vector<1x512xf32>
    %106 = vector.broadcast %105 : vector<1x512xf32> to vector<8x512xf32>
    %107 = arith.mulf %104, %106 : vector<8x512xf32>
    %c88 = arith.constant 88 : index
    %c0_42 = arith.constant 0 : index
    %108 = vector.load %arg13[%c88, %c0_42] : memref<216x512xf32, #tpu.memory_space<vmem>>, vector<8x512xf32>
    tpu.vector_store %arg13[%c88, %c0_42], %107 {strides = array<i32>} : memref<216x512xf32, #tpu.memory_space<vmem>>, vector<8x512xf32>,
    %109 = vector.extract_strided_slice %13 {offsets = [0, 127], sizes = [8, 512], strides = [1, 1]} : vector<8x768xf32> to vector<8x512xf32>
    %110 = vector.broadcast %41 : vector<1x512xf32> to vector<8x512xf32>
    %111 = arith.mulf %109, %110 : vector<8x512xf32>
    %c96 = arith.constant 96 : index
    %c0_43 = arith.constant 0 : index
    %112 = vector.load %arg13[%c96, %c0_43] : memref<216x512xf32, #tpu.memory_space<vmem>>, vector<8x512xf32>
    tpu.vector_store %arg13[%c96, %c0_43], %111 {strides = array<i32>} : memref<216x512xf32, #tpu.memory_space<vmem>>, vector<8x512xf32>,
    %113 = vector.extract_strided_slice %13 {offsets = [0, 128], sizes = [8, 512], strides = [1, 1]} : vector<8x768xf32> to vector<8x512xf32>
    %c104 = arith.constant 104 : index
    %c0_44 = arith.constant 0 : index
    %114 = vector.load %arg13[%c104, %c0_44] : memref<216x512xf32, #tpu.memory_space<vmem>>, vector<8x512xf32>
    tpu.vector_store %arg13[%c104, %c0_44], %113 {strides = array<i32>} : memref<216x512xf32, #tpu.memory_space<vmem>>, vector<8x512xf32>,
    %115 = vector.extract_strided_slice %13 {offsets = [0, 129], sizes = [8, 512], strides = [1, 1]} : vector<8x768xf32> to vector<8x512xf32>
    %116 = vector.broadcast %46 : vector<1x512xf32> to vector<8x512xf32>
    %117 = arith.mulf %115, %116 : vector<8x512xf32>
    %c112 = arith.constant 112 : index
    %c0_45 = arith.constant 0 : index
    %118 = vector.load %arg13[%c112, %c0_45] : memref<216x512xf32, #tpu.memory_space<vmem>>, vector<8x512xf32>
    tpu.vector_store %arg13[%c112, %c0_45], %117 {strides = array<i32>} : memref<216x512xf32, #tpu.memory_space<vmem>>, vector<8x512xf32>,
    %119 = vector.extract_strided_slice %13 {offsets = [0, 135], sizes = [8, 512], strides = [1, 1]} : vector<8x768xf32> to vector<8x512xf32>
    %120 = arith.mulf %36, %41 : vector<1x512xf32>
    %121 = vector.broadcast %120 : vector<1x512xf32> to vector<8x512xf32>
    %122 = arith.mulf %119, %121 : vector<8x512xf32>
    %c120 = arith.constant 120 : index
    %c0_46 = arith.constant 0 : index
    %123 = vector.load %arg13[%c120, %c0_46] : memref<216x512xf32, #tpu.memory_space<vmem>>, vector<8x512xf32>
    tpu.vector_store %arg13[%c120, %c0_46], %122 {strides = array<i32>} : memref<216x512xf32, #tpu.memory_space<vmem>>, vector<8x512xf32>,
    %124 = vector.extract_strided_slice %13 {offsets = [0, 136], sizes = [8, 512], strides = [1, 1]} : vector<8x768xf32> to vector<8x512xf32>
    %125 = vector.broadcast %36 : vector<1x512xf32> to vector<8x512xf32>
    %126 = arith.mulf %124, %125 : vector<8x512xf32>
    %c128 = arith.constant 128 : index
    %c0_47 = arith.constant 0 : index
    %127 = vector.load %arg13[%c128, %c0_47] : memref<216x512xf32, #tpu.memory_space<vmem>>, vector<8x512xf32>
    tpu.vector_store %arg13[%c128, %c0_47], %126 {strides = array<i32>} : memref<216x512xf32, #tpu.memory_space<vmem>>, vector<8x512xf32>,
    %128 = vector.extract_strided_slice %13 {offsets = [0, 137], sizes = [8, 512], strides = [1, 1]} : vector<8x768xf32> to vector<8x512xf32>
    %129 = arith.mulf %36, %46 : vector<1x512xf32>
    %130 = vector.broadcast %129 : vector<1x512xf32> to vector<8x512xf32>
    %131 = arith.mulf %128, %130 : vector<8x512xf32>
    %c136 = arith.constant 136 : index
    %c0_48 = arith.constant 0 : index
    %132 = vector.load %arg13[%c136, %c0_48] : memref<216x512xf32, #tpu.memory_space<vmem>>, vector<8x512xf32>
    tpu.vector_store %arg13[%c136, %c0_48], %131 {strides = array<i32>} : memref<216x512xf32, #tpu.memory_space<vmem>>, vector<8x512xf32>,
    %133 = vector.extract_strided_slice %13 {offsets = [0, 183], sizes = [8, 512], strides = [1, 1]} : vector<8x768xf32> to vector<8x512xf32>
    %134 = arith.mulf %26, %31 : vector<1x512xf32>
    %135 = arith.mulf %134, %41 : vector<1x512xf32>
    %136 = vector.broadcast %135 : vector<1x512xf32> to vector<8x512xf32>
    %137 = arith.mulf %133, %136 : vector<8x512xf32>
    %c144 = arith.constant 144 : index
    %c0_49 = arith.constant 0 : index
    %138 = vector.load %arg13[%c144, %c0_49] : memref<216x512xf32, #tpu.memory_space<vmem>>, vector<8x512xf32>
    tpu.vector_store %arg13[%c144, %c0_49], %137 {strides = array<i32>} : memref<216x512xf32, #tpu.memory_space<vmem>>, vector<8x512xf32>,
    %139 = vector.extract_strided_slice %13 {offsets = [0, 184], sizes = [8, 512], strides = [1, 1]} : vector<8x768xf32> to vector<8x512xf32>
    %140 = arith.mulf %26, %31 : vector<1x512xf32>
    %141 = vector.broadcast %140 : vector<1x512xf32> to vector<8x512xf32>
    %142 = arith.mulf %139, %141 : vector<8x512xf32>
    %c152 = arith.constant 152 : index
    %c0_50 = arith.constant 0 : index
    %143 = vector.load %arg13[%c152, %c0_50] : memref<216x512xf32, #tpu.memory_space<vmem>>, vector<8x512xf32>
    tpu.vector_store %arg13[%c152, %c0_50], %142 {strides = array<i32>} : memref<216x512xf32, #tpu.memory_space<vmem>>, vector<8x512xf32>,
    %144 = vector.extract_strided_slice %13 {offsets = [0, 185], sizes = [8, 512], strides = [1, 1]} : vector<8x768xf32> to vector<8x512xf32>
    %145 = arith.mulf %26, %31 : vector<1x512xf32>
    %146 = arith.mulf %145, %46 : vector<1x512xf32>
    %147 = vector.broadcast %146 : vector<1x512xf32> to vector<8x512xf32>
    %148 = arith.mulf %144, %147 : vector<8x512xf32>
    %c160 = arith.constant 160 : index
    %c0_51 = arith.constant 0 : index
    %149 = vector.load %arg13[%c160, %c0_51] : memref<216x512xf32, #tpu.memory_space<vmem>>, vector<8x512xf32>
    tpu.vector_store %arg13[%c160, %c0_51], %148 {strides = array<i32>} : memref<216x512xf32, #tpu.memory_space<vmem>>, vector<8x512xf32>,
    %150 = vector.extract_strided_slice %13 {offsets = [0, 191], sizes = [8, 512], strides = [1, 1]} : vector<8x768xf32> to vector<8x512xf32>
    %151 = arith.mulf %26, %41 : vector<1x512xf32>
    %152 = vector.broadcast %151 : vector<1x512xf32> to vector<8x512xf32>
    %153 = arith.mulf %150, %152 : vector<8x512xf32>
    %c168 = arith.constant 168 : index
    %c0_52 = arith.constant 0 : index
    %154 = vector.load %arg13[%c168, %c0_52] : memref<216x512xf32, #tpu.memory_space<vmem>>, vector<8x512xf32>
    tpu.vector_store %arg13[%c168, %c0_52], %153 {strides = array<i32>} : memref<216x512xf32, #tpu.memory_space<vmem>>, vector<8x512xf32>,
    %155 = vector.extract_strided_slice %13 {offsets = [0, 192], sizes = [8, 512], strides = [1, 1]} : vector<8x768xf32> to vector<8x512xf32>
    %156 = vector.broadcast %26 : vector<1x512xf32> to vector<8x512xf32>
    %157 = arith.mulf %155, %156 : vector<8x512xf32>
    %c176 = arith.constant 176 : index
    %c0_53 = arith.constant 0 : index
    %158 = vector.load %arg13[%c176, %c0_53] : memref<216x512xf32, #tpu.memory_space<vmem>>, vector<8x512xf32>
    tpu.vector_store %arg13[%c176, %c0_53], %157 {strides = array<i32>} : memref<216x512xf32, #tpu.memory_space<vmem>>, vector<8x512xf32>,
    %159 = vector.extract_strided_slice %13 {offsets = [0, 193], sizes = [8, 512], strides = [1, 1]} : vector<8x768xf32> to vector<8x512xf32>
    %160 = arith.mulf %26, %46 : vector<1x512xf32>
    %161 = vector.broadcast %160 : vector<1x512xf32> to vector<8x512xf32>
    %162 = arith.mulf %159, %161 : vector<8x512xf32>
    %c184 = arith.constant 184 : index
    %c0_54 = arith.constant 0 : index
    %163 = vector.load %arg13[%c184, %c0_54] : memref<216x512xf32, #tpu.memory_space<vmem>>, vector<8x512xf32>
    tpu.vector_store %arg13[%c184, %c0_54], %162 {strides = array<i32>} : memref<216x512xf32, #tpu.memory_space<vmem>>, vector<8x512xf32>,
    %164 = vector.extract_strided_slice %13 {offsets = [0, 199], sizes = [8, 512], strides = [1, 1]} : vector<8x768xf32> to vector<8x512xf32>
    %165 = arith.mulf %26, %36 : vector<1x512xf32>
    %166 = arith.mulf %165, %41 : vector<1x512xf32>
    %167 = vector.broadcast %166 : vector<1x512xf32> to vector<8x512xf32>
    %168 = arith.mulf %164, %167 : vector<8x512xf32>
    %c192 = arith.constant 192 : index
    %c0_55 = arith.constant 0 : index
    %169 = vector.load %arg13[%c192, %c0_55] : memref<216x512xf32, #tpu.memory_space<vmem>>, vector<8x512xf32>
    tpu.vector_store %arg13[%c192, %c0_55], %168 {strides = array<i32>} : memref<216x512xf32, #tpu.memory_space<vmem>>, vector<8x512xf32>,
    %170 = vector.extract_strided_slice %13 {offsets = [0, 200], sizes = [8, 512], strides = [1, 1]} : vector<8x768xf32> to vector<8x512xf32>
    %171 = arith.mulf %26, %36 : vector<1x512xf32>
    %172 = vector.broadcast %171 : vector<1x512xf32> to vector<8x512xf32>
    %173 = arith.mulf %170, %172 : vector<8x512xf32>
    %c200 = arith.constant 200 : index
    %c0_56 = arith.constant 0 : index
    %174 = vector.load %arg13[%c200, %c0_56] : memref<216x512xf32, #tpu.memory_space<vmem>>, vector<8x512xf32>
    tpu.vector_store %arg13[%c200, %c0_56], %173 {strides = array<i32>} : memref<216x512xf32, #tpu.memory_space<vmem>>, vector<8x512xf32>,
    %175 = vector.extract_strided_slice %13 {offsets = [0, 201], sizes = [8, 512], strides = [1, 1]} : vector<8x768xf32> to vector<8x512xf32>
    %176 = arith.mulf %26, %36 : vector<1x512xf32>
    %177 = arith.mulf %176, %46 : vector<1x512xf32>
    %178 = vector.broadcast %177 : vector<1x512xf32> to vector<8x512xf32>
    %179 = arith.mulf %175, %178 : vector<8x512xf32>
    %c208 = arith.constant 208 : index
    %c0_57 = arith.constant 0 : index
    %180 = vector.load %arg13[%c208, %c0_57] : memref<216x512xf32, #tpu.memory_space<vmem>>, vector<8x512xf32>
    tpu.vector_store %arg13[%c208, %c0_57], %179 {strides = array<i32>} : memref<216x512xf32, #tpu.memory_space<vmem>>, vector<8x512xf32>,
    %c0_58 = arith.constant 0 : index
    %c0_59 = arith.constant 0 : index
    %181 = vector.load %arg4[%c0_58, %c0_59] : memref<8x216xf32, #tpu.memory_space<vmem>>, vector<8x216xf32>
    %c0_60 = arith.constant 0 : index
    %c0_61 = arith.constant 0 : index
    %182 = vector.load %arg13[%c0_60, %c0_61] : memref<216x512xf32, #tpu.memory_space<vmem>>, vector<216x512xf32>
    %cst_62 = arith.constant dense<0.000000e+00> : vector<8x512xf32>
    %183 = tpu.matmul %181, %182, %cst_62 {dimension_numbers = #tpu.dot_dimension_numbers<[1], [0], [0], [1], [0, 0, 1, 1], [], []>} : vector<8x216xf32>, vector<216x512xf32>, vector<8x512xf32> -> vector<8x512xf32>
    %c0_63 = arith.constant 0 : index
    %c0_64 = arith.constant 0 : index
    %184 = vector.load %arg8[%c0_63, %c0_64] : memref<8x1xf32, #tpu.memory_space<vmem>>, vector<8x1xf32>
    %185 = vector.broadcast %184 : vector<8x1xf32> to vector<8x512xf32>
    %186 = arith.mulf %183, %185 : vector<8x512xf32>
    %c0_65 = arith.constant 0 : index
    %c0_66 = arith.constant 0 : index
    %187 = vector.load %arg9[%c0_65, %c0_66] : memref<8x1xf32, #tpu.memory_space<vmem>>, vector<8x1xf32>
    %188 = vector.broadcast %187 : vector<8x1xf32> to vector<8x512xf32>
    %189 = arith.addf %186, %188 : vector<8x512xf32>
    %cst_67 = arith.constant 0.000000e+00 : f32
    %190 = vector.broadcast %cst_67 : f32 to vector<8x512xf32>
    %191 = arith.maximumf %189, %190 : vector<8x512xf32>
    %c0_68 = arith.constant 0 : index
    %c0_69 = arith.constant 0 : index
    %192 = vector.load %arg5[%c0_68, %c0_69] : memref<32x8xf32, #tpu.memory_space<vmem>>, vector<32x8xf32>
    %cst_70 = arith.constant dense<0.000000e+00> : vector<32x512xf32>
    %193 = tpu.matmul %192, %191, %cst_70 {dimension_numbers = #tpu.dot_dimension_numbers<[1], [0], [0], [1], [0, 0, 1, 1], [], []>} : vector<32x8xf32>, vector<8x512xf32>, vector<32x512xf32> -> vector<32x512xf32>
    %c0_71 = arith.constant 0 : index
    %c0_72 = arith.constant 0 : index
    %194 = vector.load %arg10[%c0_71, %c0_72] : memref<32x1xf32, #tpu.memory_space<vmem>>, vector<32x1xf32>
    %195 = vector.broadcast %194 : vector<32x1xf32> to vector<32x512xf32>
    %196 = arith.mulf %193, %195 : vector<32x512xf32>
    %c0_73 = arith.constant 0 : index
    %c0_74 = arith.constant 0 : index
    %197 = vector.load %arg11[%c0_73, %c0_74] : memref<32x1xf32, #tpu.memory_space<vmem>>, vector<32x1xf32>
    %198 = vector.broadcast %197 : vector<32x1xf32> to vector<32x512xf32>
    %199 = arith.addf %196, %198 : vector<32x512xf32>
    %200 = arith.addf %199, %1 : vector<32x512xf32>
    %cst_75 = arith.constant 0.000000e+00 : f32
    %201 = vector.broadcast %cst_75 : f32 to vector<32x512xf32>
    %202 = arith.maximumf %200, %201 : vector<32x512xf32>
    %c0_76 = arith.constant 0 : index
    %c0_77 = arith.constant 0 : index
    %c0_78 = arith.constant 0 : index
    %203 = vector.load %arg12[%c0_76, %c0_77, %c0_78] : memref<1x32x512xf32, #tpu.memory_space<vmem>>, vector<1x32x512xf32>
    %204 = vector.shape_cast %203 : vector<1x32x512xf32> to vector<32x512xf32>
    %205 = vector.shape_cast %202 : vector<32x512xf32> to vector<1x32x512xf32>
    tpu.vector_store %arg12[%c0_76, %c0_77, %c0_78], %205 {strides = array<i32>} : memref<1x32x512xf32, #tpu.memory_space<vmem>>, vector<1x32x512xf32>,
    return
  }
  func.func @transform_0(%arg0: i32) -> (i32, i32, i32) {
    %c0_i32 = arith.constant 0 : i32
    %c0_i32_0 = arith.constant 0 : i32
    %c0_i32_1 = arith.constant 0 : i32
    return %arg0, %c0_i32, %c0_i32_0 : i32, i32, i32
  }
  func.func @transform_1(%arg0: i32) -> (i32, i32) {
    %c0_i32 = arith.constant 0 : i32
    %c0_i32_0 = arith.constant 0 : i32
    %c0_i32_1 = arith.constant 0 : i32
    return %c0_i32, %c0_i32_0 : i32, i32
  }
  func.func @transform_2(%arg0: i32) -> (i32, i32) {
    %c0_i32 = arith.constant 0 : i32
    %c0_i32_0 = arith.constant 0 : i32
    %c0_i32_1 = arith.constant 0 : i32
    return %c0_i32, %c0_i32_0 : i32, i32
  }
  func.func @transform_3(%arg0: i32) -> (i32, i32) {
    %c0_i32 = arith.constant 0 : i32
    %c0_i32_0 = arith.constant 0 : i32
    %c0_i32_1 = arith.constant 0 : i32
    return %c0_i32, %c0_i32_0 : i32, i32
  }
  func.func @transform_4(%arg0: i32) -> (i32, i32) {
    %c0_i32 = arith.constant 0 : i32
    %c0_i32_0 = arith.constant 0 : i32
    %c0_i32_1 = arith.constant 0 : i32
    return %c0_i32, %c0_i32_0 : i32, i32
  }
  func.func @transform_5(%arg0: i32) -> (i32, i32) {
    %c0_i32 = arith.constant 0 : i32
    %c0_i32_0 = arith.constant 0 : i32
    %c0_i32_1 = arith.constant 0 : i32
    return %c0_i32, %c0_i32_0 : i32, i32
  }
  func.func @transform_6(%arg0: i32) -> (i32, i32) {
    %c0_i32 = arith.constant 0 : i32
    %c0_i32_0 = arith.constant 0 : i32
    %c0_i32_1 = arith.constant 0 : i32
    return %c0_i32, %c0_i32_0 : i32, i32
  }
  func.func @transform_7(%arg0: i32) -> (i32, i32) {
    %c0_i32 = arith.constant 0 : i32
    %c0_i32_0 = arith.constant 0 : i32
    %c0_i32_1 = arith.constant 0 : i32
    return %c0_i32, %c0_i32_0 : i32, i32
  }
  func.func @transform_8(%arg0: i32) -> (i32, i32) {
    %c0_i32 = arith.constant 0 : i32
    %c0_i32_0 = arith.constant 0 : i32
    %c0_i32_1 = arith.constant 0 : i32
    return %c0_i32, %c0_i32_0 : i32, i32
  }
  func.func @transform_9(%arg0: i32) -> (i32, i32) {
    %c0_i32 = arith.constant 0 : i32
    %c0_i32_0 = arith.constant 0 : i32
    %c0_i32_1 = arith.constant 0 : i32
    return %c0_i32, %c0_i32_0 : i32, i32
  }
  func.func @transform_10(%arg0: i32) -> (i32, i32) {
    %c0_i32 = arith.constant 0 : i32
    %c0_i32_0 = arith.constant 0 : i32
    %c0_i32_1 = arith.constant 0 : i32
    return %c0_i32, %c0_i32_0 : i32, i32
  }
  func.func @transform_11(%arg0: i32) -> (i32, i32, i32) {
    %c0_i32 = arith.constant 0 : i32
    %c0_i32_0 = arith.constant 0 : i32
    %c0_i32_1 = arith.constant 0 : i32
    return %arg0, %c0_i32, %c0_i32_0 : i32, i32, i32
  }
}

</mosaic_0001>

<bundles_post_ra>
// kernel: tpu_custom_call.1
= control target key start
LH: loop header
LB: loop body
LE: loop exit
PB: predicated region body
PF: predicated region fallthrough
CT: control target
= control target key end

     0   :  { %16 = vsyncpa [#allocation4], 0  ;;  %s4825_s0 = inlined_call_operand.hbm [shape: f32[2,32,512], index: 0, kind: input, shape index: {}]   ;;  %s4826_s1 = inlined_call_operand.vmem [shape: s32[3,512], index: 1, kind: input, shape index: {}]   ;;  %s4827_s2 = inlined_call_operand.vmem [shape: f32[8,32], index: 2, kind: input, shape index: {}]   ;;  %s4828_s3 = inlined_call_operand.vmem [shape: f32[8,216], index: 3, kind: input, shape index: {}]   ;;  %s4829_s4 = inlined_call_operand.vmem [shape: f32[32,8], index: 4, kind: input, shape index: {}]   ;;  %s4830_s5 = inlined_call_operand.vmem [shape: f32[8,1], index: 5, kind: input, shape index: {}]   ;;  %s4831_s6 = inlined_call_operand.vmem [shape: f32[8,1], index: 6, kind: input, shape index: {}]   ;;  %s4832_s7 = inlined_call_operand.vmem [shape: f32[8,1], index: 7, kind: input, shape index: {}]   ;;  %s4833_s8 = inlined_call_operand.vmem [shape: f32[8,1], index: 8, kind: input, shape index: {}]   ;;  %s4834_s9 = inlined_call_operand.vmem [shape: f32[32,1], index: 9, kind: input, shape index: {}]   ;;  %s4835_s10 = inlined_call_operand.vmem [shape: f32[32,1], index: 10, kind: input, shape index: {}]   ;;  %s4836_s11 = inlined_call_operand.hbm [shape: f32[2,32,512], index: 11, kind: output, shape index: {}]  }
   0x1   :  { %18 = vsyncpa [#allocation4 + $0x1], 0 }
   0x2   :  { %19 = vsyncpa [#allocation5], 0 }
   0x3   :  { %21 = vsyncpa [#allocation5 + $0x1], 0  ;;  %s3251_s17 = smov 0   ;;  %s3253_s18 = smov 0  }
   0x4   :  { %s3255_s19 = smov 0   ;;  %s3257_s20 = smov 0  }
   0x5 LB: > { %4873 = sst [smem:[#allocation9_spill]] %s3154_s17  ;;  %s3272_s21 = sadd.s32 4294967295, %s3166_s20   ;;  %s3166_s20 = sphi %s3257_s20, %s4963_s20   ;;  %s3162_s19 = sphi %s3255_s19, %s4965_s19   ;;  %s3158_s18 = sphi %s3253_s18, %s4967_s18   ;;  %s3154_s17 = sphi %s3251_s17, %s4966_s17  }
   0x6   : > { %4874 = sst [smem:[#allocation10_spill]] %s3162_s19  ;;  %s2615_s22 = sadd.s32 4294967294, %s3166_s20  }
   0x7   : > { %s3276_s23 = sadd.s32 1, %s3166_s20   ;;  %s34_s24 = sadd.s32 1, %s3162_s19 }
   0x8   : > { %4875 = sst [smem:[#allocation11_spill]] %s3276_s23  ;;  %s31_s25 = ssub.s32 %s3166_s20, %s3276_s23 }
   0x9   : > { %p41_p0 = scmp.ne.s32.totalorder %s3162_s19, %s3158_s18  ;;  %p32_p1 = scmp.eq.s32.totalorder %s31_s25, 0 }
   0xa   : > { %p42_p2 = scmp.eq.s32.totalorder %s3166_s20, 0  ;;  %p47_p3 = scmp.ne.s32.totalorder %s3158_s18, %s3154_s17 }
   0xb   : > { %p48_p4 = scmp.eq.s32.totalorder %s3272_s21, 0  ;;  %p281_p7 = scmp.eq.s32.totalorder %s3272_s21, 1 }
   0xc   : > { %s3288_s26 = scalar_select %p32_p1, %s3162_s19, %s34_s24  }
   0xd   : > { %p3290_p5 = por %p42_p2, %p41_p0  ;;  %p3294_p6 = por %p48_p4, %p47_p3 }
   0xe   : > { %4876 = sst [smem:[#allocation12_spill]] %s3288_s26  ;;  %p287_p8 = scmp.eq.s32.totalorder %s2615_s22, 1 }
   0xf   : > { %p2669_p10 = scmp.lt.s32.totalorder %s3166_s20, 2  ;;  %p3301_p11 = por %p281_p7, %p41_p0 }
  0x10   : > { %p3305_p12 = por %p287_p8, %p47_p3  ;;  %s337_s12 = sand.u32 1, %s3162_s19  }
  0x11   : > { %s2655_s13 = sshll.u32 %s3166_s20, 7  ;;  %s2618_s14 = sshll.u32 %s337_s12, 7 }
  0x12   : > { %s4880_s30 = scalar_select %p3305_p12, 1, 0 }
  0x13   : > { %s346_s24 = scalar_lea.hbm %s4825_s0, %s2655_s13  ;;  %s341_s22 = scalar_lea.vmem [#allocation3], %s2618_s14 }
  0x14   : > { %4881 = sst [smem:[#allocation13_spill]] %s4880_s30  ;;  %s347_s25 = sshll.u32 %s346_s24, 4  ;;  %s348_s25 = int_to_ptr.hbm [resolvable:$true] %s347_s25 }
  0x15   : > { %s349_s26 = sshll.u32 %s341_s22, 4  ;;  %p3316_p13 = pnand %p2669_p10, %p3290_p5  ;;  %s350_s26 = int_to_ptr.vmem [resolvable:$true] %s349_s26 }
  0x16   : > { %p2621_p0 = scmp.ge.s32.totalorder %s3166_s20, 1  ;;  %p357_p1 = scmp.lt.s32.totalorder %s3166_s20, 3 }
  0x17   : > { %s338_s19 = scalar_lea.sflag [#allocation4], %s337_s12  ;;  %s3070_s30 = sshra.s32 %s348_s25, 4  ;;  %s3071_s30 = int_to_ptr.hbm [resolvable:$true] %s3070_s30 }
  0x18   : > { %s3072_s17 = scalar_lea.hbm %s3071_s30, 128  ;;  %p3074_p3 = pneg %p3316_p13 }
  0x19   : > { %p3073_p2 = scmp.ne.s32.totalorder %s3071_s30, %s3072_s17  ;;  %s3077_s27 = scalar_lea.hbm %s4825_s0, 256 }
  0x1a   : > { %p3078_p5 = scmp.lt.s32.totalorder %s3071_s30, %s4825_s0  ;;  %p3079_p8 = scmp.lt.s32.totalorder %s3077_s27, %s3072_s17 }
  0x1b   : > { %p3075_p4 = pnand %p3074_p3, %p3073_p2 }
  0x1c   : > { %p3080_p10 = por %p3079_p8, %p3078_p5 }
  0x1d   : > { %p3076_p7 = pneg %p3075_p4 }
  0x1f   : > { %p3081_p9 = pnand %p3080_p10, %p3076_p7 }
  0x21   : > { %3084 = shalt.err (!%p3081_p9)
}
  0x22   : > { %s3168_s12 = smov 512   ;;  %s3169_s24 = smov 32  }
  0x23   : > { %2664 = dma.hbm_to_vmem [thread:$0]  (!%p3316_p13), %s348_s25, 2048, %s350_s26, %s338_s19, %s3168_s12, %s3168_s12, %s3169_s24  }
  0x24   : > { %p358_p2 = pnand %p2621_p0, %p357_p1 }
  0x26   : > { %361 = sbr.rel (%p358_p2) target bundleno = 1513 (0x5e9), region = 64 }
  0x2b   : > { %s3337_s22 = sand.u32 1, %s3158_s18  }
  0x2c   : > { %s4847_s17 = sshll.u32 %s3337_s22, 7  ;;  %s364_s30 = scalar_lea.sflag [#allocation4], %s3337_s22 }
  0x2d   : > { %s3343_s13 = scalar_lea.vmem [#allocation3], %s4847_s17 }
  0x2e   : > { %3145 = dma.done.wait (%p3294_p6), %s364_s30, 2048  }
  0x2f   : > { %3147 = vsyncadd (%p3294_p6), %s364_s30, 4294965248  ;;  %v3170_v0 = vmov 0   ;;  %v508_v1 = vld [vmem:[%s4830_s5] sm:$0xff]  ;;  %v420_v3 = vld [vmem:[%s3343_s13 + $0x68] sm:$0xff]  ;;  %v3171_v14 = vmov 0.0   ;;  %vm424_vm2 = vcmask 261120  }
  0x30   : > { %2726 = vset.pattern.permute.xlu0 %v3170_v0  ;;  %3052 = vset.pattern.permute.xlu1 %v3170_v0  ;;  %v419_v2 = vld [vmem:[%s3343_s13 + $0x60] sm:$0xff]  ;;  %v421_v4 = vld [vmem:[%s3343_s13 + $0x70] sm:$0xff]  ;;  %v416_v6 = vld [vmem:[%s3343_s13 + $0x48] sm:$0xff]  ;;  %s3172_s19 = smov 56   ;;  %s3173_s23 = smov 55   ;;  %vm619_vm6 = vcmask 457728  }
  0x31   : > { %3053 = vset.pattern.permute.xlu2 %v3170_v0  ;;  %511 = vperm.xlu0 %2726, %v508_v1   ;;  %v415_v5 = vld [vmem:[%s3343_s13 + $0x40] sm:$0xff]  ;;  %v417_v7 = vld [vmem:[%s3343_s13 + $0x50] sm:$0xff]  ;;  %v412_v9 = vld [vmem:[%s3343_s13 + $0x28] sm:$0xff]  ;;  %s3174_s26 = smov 57   ;;  %s3175_s28 = smov 63   ;;  %vm564_vm7 = vcmask 449536  }
  0x32   : > { %440 = vmatpush.msra.mxu3 %v419_v2  ;;  %460 = vmatpush.msra.mxu1 %v420_v3  ;;  %v411_v8 = vld [vmem:[%s3343_s13 + $0x20] sm:$0xff]  ;;  %v413_v10 = vld [vmem:[%s3343_s13 + $0x30] sm:$0xff]  ;;  %v408_v16 = vld [vmem:[%s3343_s13 + $0x8] sm:$0xff]  ;;  %s3176_s25 = smov 64   ;;  %s3177_s14 = smov 65   ;;  %vm675_vm8 = vcmask 465920  }
  0x33   : > { %480 = vmatpush.msra.mxu2 %v421_v4  ;;  %v3364_v11 = vld [vmem:[%s4826_s1] ss:$4 sm:$0xf]  ;;  %v3369_v12 = vld [vmem:[%s4826_s1 + $0x1] ss:$4 sm:$0xf] }
  0x34   : > { %441 = vmatpush.msra.mxu3 %v415_v5  ;;  %461 = vmatpush.msra.mxu1 %v416_v6  ;;  %vm537_vm0 = vcmp.ge.s32.totalorder %v3364_v11, 1  ;;  %v407_v13 = vld [vmem:[%s3343_s13] sm:$0xff]  ;;  %vm541_vm1 = vcmp.ge.s32.totalorder %v3369_v12, 1  ;;  %v409_v17 = vld [vmem:[%s3343_s13 + $0x10] sm:$0xff]  ;;  %v422_v25 = vld [vmem:[%s3343_s13 + $0x78] sm:$0xff]  ;;  %vm543_vm5 = vcmp.lt.s32.totalorder %v3369_v12, 7 }
  0x35   : > { %481 = vmatpush.msra.mxu2 %v417_v7  ;;  %v3374_v15 = vsel %vm537_vm0, 1.0, %v3171_v14  ;;  %v3380_v18 = vsel %vm541_vm1, 1.0, %v3171_v14  ;;  %v423_v19 = vld [vmem:[%s4827_s2] sm:$0xff]  ;;  %v418_v27 = vld [vmem:[%s3343_s13 + $0x58] sm:$0xff]  ;;  %v3430_v51 = vsel %vm543_vm5, 1.0, %v3171_v14  ;;  %s3178_s27 = smov 71  }
  0x36   : > { %442 = vmatpush.msra.mxu3 %v411_v8  ;;  %462 = vmatpush.msra.mxu1 %v412_v9  ;;  %v549_v20 = vmul.f32 %v3380_v18, %v3374_v15  ;;  %v518_v21 = vld [vmem:[%s4831_s6] sm:$0xff]  ;;  %v414_v29 = vld [vmem:[%s3343_s13 + $0x38] sm:$0xff]  ;;  %v774_v46 = vperm.slane %v3374_v15, 0  ;;  %v775_v47 = vperm.slane %v3374_v15, 1  ;;  %v776_v53 = vperm.slane %v3374_v15, 2  ;;  %s3179_s15 = smov 72  }
  0x37   : > { %482 = vmatpush.msra.mxu2 %v413_v10  ;;  %v2629_v22 = vld [vmem:[%s4826_s1 + $0x2] ss:$4 sm:$0xf]  ;;  %v410_v33 = vld [vmem:[%s3343_s13 + $0x18] sm:$0xff]  ;;  %v777_v54 = vperm.slane %v3374_v15, 3  ;;  %v881_v56 = vmul.f32 %v3430_v51, %v3374_v15  ;;  %s3180_s16 = smov 73  }
  0x38   : > { %443 = vmatpush.msra.mxu3 %v407_v13  ;;  %463 = vmatpush.msra.mxu1 %v408_v16  ;;  %vm545_vm3 = vcmp.ge.s32.totalorder %v2629_v22, 1  ;;  %v609_v23 = vperm.slane %v549_v20, 2  ;;  %v608_v24 = vperm.slane %v549_v20, 1  ;;  %v607_v30 = vperm.slane %v549_v20, 0  ;;  %s4856_s12 = smov 119   ;;  %s3182_s24 = smov 9  }
  0x39   : > { %483 = vmatpush.msra.mxu2 %v409_v17  ;;  %2624 = vmatmul.msk.f32.vlgmr.msra.gmra.mxu3 %vm424_vm2, %v423_v19  ;;  %v3397_v26 = vsel %vm545_vm3, 1.0, %v3171_v14  ;;  %vm547_vm4 = vcmp.lt.s32.totalorder %v2629_v22, 7  ;;  %v610_v34 = vperm.slane %v549_v20, 3  ;;  %v2727_v48 = vpack.i.bf16 %v775_v47, %v774_v46  ;;  %s4848_s30 = smov 120   ;;  %s4861_s17 = smov 8  }
  0x3a   : > { %2625 = vmatmul.msk.f32.vlgmr.msra.gmra.mxu1 %vm424_vm2, %v423_v19  ;;  %2626 = vmatmul.msk.f32.vlgmr.msra.gmra.mxu2 %vm424_vm2, %v423_v19  ;;  %v550_v28 = vmul.f32 %v549_v20, %v3397_v26  ;;  %v3411_v37 = vsel %vm547_vm4, 1.0, %v3171_v14  ;;  %v717_v42 = vmul.f32 %v3397_v26, %v3374_v15  ;;  %v2732_v58 = vpack.i.bf16 %v777_v54, %v776_v53 }
  0x3b   : > { %521 = vperm.xlu0 %2726, %v518_v21   ;;  %615 = vrot.lane.b32.xlu2 %v609_v23, %s3172_s19  ;;  %v661_v38 = vmul.f32 %v549_v20, %v3411_v37  ;;  %v827_v52 = vmul.f32 %v3411_v37, %v3374_v15  ;;  %v882_v59 = vmul.f32 %v881_v56, %v3397_v26  ;;  %v939_v2 = vperm.slane %v881_v56, 2 }
  0x3c   : > { %613 = vrot.lane.b32.xlu1 %v608_v24, %s3172_s19  ;;  %500 = vmatpush.msrb.mxu3 %v422_v25  ;;  %v554_v31 = vperm.slane %v550_v28, 2  ;;  %v552_v32 = vperm.slane %v550_v28, 0  ;;  %v555_v35 = vperm.slane %v550_v28, 3  ;;  %v553_v36 = vperm.slane %v550_v28, 1 }
  0x3d   : > { %v665_v39 = vperm.slane %v661_v38, 2  ;;  %v664_v40 = vperm.slane %v661_v38, 1  ;;  %v663_v41 = vperm.slane %v661_v38, 0  ;;  %v720_v43 = vperm.slane %v717_v42, 1 }
  0x3e   : > { %501 = vmatpush.msrb.mxu3 %v418_v27  ;;  %v719_v44 = vperm.slane %v717_v42, 0  ;;  %v666_v45 = vperm.slane %v661_v38, 3  ;;  %v722_v49 = vperm.slane %v717_v42, 3  ;;  %v721_v50 = vperm.slane %v717_v42, 2 }
  0x3f   : > { %v830_v55 = vperm.slane %v827_v52, 1  ;;  %v829_v57 = vperm.slane %v827_v52, 0  ;;  %v884_v60 = vperm.slane %v882_v59, 0  ;;  %v832_v61 = vperm.slane %v827_v52, 3 }
  0x40   : > { %502 = vmatpush.msrb.mxu3 %v414_v29  ;;  %v831_v62 = vperm.slane %v827_v52, 2  ;;  %v887_v63 = vperm.slane %v882_v59, 3  ;;  %v886_v0 = vperm.slane %v882_v59, 2  ;;  %v885_v1 = vperm.slane %v882_v59, 1 }
  0x41   : > { %v938_v3 = vperm.slane %v881_v56, 1  ;;  %v937_v4 = vperm.slane %v881_v56, 0  ;;  %v989_v5 = vmul.f32 %v881_v56, %v3411_v37  ;;  %v940_v8 = vperm.slane %v881_v56, 3 }
  0x42   : > { %503 = vmatpush.msrb.mxu3 %v410_v33  ;;  %vm731_vm9 = vcmask 515072   ;;  %vm786_vm10 = vcmask 523264   ;;  %vm760_vm11 = vcmask 531456   ;;  %vm704_vm12 = vcmask 580608  }
  0x43   : > { %611 = vrot.lane.b32.xlu0 %v607_v30, %s3172_s19  ;;  %560 = vrot.lane.b32.xlu2 %v554_v31, %s3173_s23  ;;  %v992_v6 = vperm.slane %v989_v5, 1  ;;  %v991_v7 = vperm.slane %v989_v5, 0  ;;  %v994_v9 = vperm.slane %v989_v5, 3  ;;  %v993_v10 = vperm.slane %v989_v5, 2 }
  0x44   : > { %556 = vrot.lane.b32.xlu1 %v552_v32, %s3173_s23  ;;  %2627 = vmatmul.msk.f32.vlgmr.msrb.gmra.mxu3 %vm424_vm2, %v423_v19  ;;  %vm648_vm13 = vcmask 588800   ;;  %vm593_vm14 = vcmask 596992   ;;  %vm539_vm15 = vcmp.lt.s32.totalorder %v3364_v11, 7  ;;  %vm1057_vm0 = vcmask 973824  }
  0x45   : > { %vm1086_vm1 = vcmask 72704   ;;  %vm4869_vm2 = vcmask 982016   ;;  %vm1141_vm3 = vcmask 64512   ;;  %vm1168_vm4 = vcmask 990208  }
  0x46   : > { %vm1197_vm5 = vcmask 56320  }
  0x4b   : > { %617 = vrot.lane.b32.xlu0 %v610_v34, %s3172_s19  ;;  %562 = vrot.lane.b32.xlu2 %v555_v35, %s3173_s23 }
  0x4c   : > { %558 = vrot.lane.b32.xlu1 %v553_v36, %s3173_s23 }
  0x53   : > { %671 = vrot.lane.b32.xlu0 %v665_v39, %s3174_s26  ;;  %669 = vrot.lane.b32.xlu2 %v664_v40, %s3174_s26 }
  0x54   : > { %667 = vrot.lane.b32.xlu1 %v663_v41, %s3174_s26 }
  0x5b   : > { %725 = vrot.lane.b32.xlu0 %v720_v43, %s3175_s28  ;;  %723 = vrot.lane.b32.xlu2 %v719_v44, %s3175_s28 }
  0x5c   : > { %673 = vrot.lane.b32.xlu1 %v666_v45, %s3174_s26 }
  0x63   : > { %2728 = vrot.lane.b32.xlu0 %v2727_v48, %s3176_s25  ;;  %729 = vrot.lane.b32.xlu2 %v722_v49, %s3175_s28 }
  0x64   : > { %727 = vrot.lane.b32.xlu1 %v721_v50, %s3175_s28 }
  0x6b   : > { %835 = vrot.lane.b32.xlu0 %v830_v55, %s3177_s14  ;;  %833 = vrot.lane.b32.xlu2 %v829_v57, %s3177_s14 }
  0x6c   : > { %2733 = vrot.lane.b32.xlu1 %v2732_v58, %s3176_s25 }
  0x73   : > { %888 = vrot.lane.b32.xlu0 %v884_v60, %s3178_s27  ;;  %839 = vrot.lane.b32.xlu2 %v832_v61, %s3177_s14 }
  0x74   : > { %837 = vrot.lane.b32.xlu1 %v831_v62, %s3177_s14 }
  0x7b   : > { %894 = vrot.lane.b32.xlu0 %v887_v63, %s3178_s27  ;;  %892 = vrot.lane.b32.xlu2 %v886_v0, %s3178_s27 }
  0x7c   : > { %890 = vrot.lane.b32.xlu1 %v885_v1, %s3178_s27 }
  0x83   : > { %945 = vrot.lane.b32.xlu0 %v939_v2, %s3179_s15  ;;  %943 = vrot.lane.b32.xlu2 %v938_v3, %s3179_s15 }
  0x84   : > { %941 = vrot.lane.b32.xlu1 %v937_v4, %s3179_s15 }
  0x8b   : > { %997 = vrot.lane.b32.xlu0 %v992_v6, %s3180_s16  ;;  %995 = vrot.lane.b32.xlu2 %v991_v7, %s3180_s16 }
  0x8c   : > { %947 = vrot.lane.b32.xlu1 %v940_v8, %s3179_s15 }
  0x93   : > { %1001 = vrot.lane.b32.xlu2 %v994_v9, %s3180_s16 }
  0x94   : > { %999 = vrot.lane.b32.xlu1 %v993_v10, %s3180_s16 }
  0x95   : > { %v616_v12 = vpop.permute.xlu2 %615 }
  0x9d   : > { %v561_v13 = vpop.permute.xlu2 %560 }
  0xa3   : > { %v3459_v15 = vpop.permute.xlu0 %511 }
  0xa5   : > { %v3461_v16 = vpop.permute.xlu2 %562 }
  0xa6   : > { %v567_v45 = vsel %vm564_vm7, %v561_v13, %v3461_v16 }
  0xad   : > { %v3463_v17 = vpop.permute.xlu0 %521  ;;  %v670_v21 = vpop.permute.xlu2 %669 }
  0xae   : > { %v614_v19 = vpop.permute.xlu1 %613 }
  0xaf   : > { %v621_v41 = vsel %vm619_vm6, %v614_v19, %v616_v12 }
  0xb5   : > { %v612_v20 = vpop.permute.xlu0 %611  ;;  %v724_v32 = vpop.permute.xlu2 %723 }
  0xb6   : > { %v557_v22 = vpop.permute.xlu1 %556  ;;  %v620_v59 = vsel %vm619_vm6, %v612_v20, %v614_v19  ;;  %v628_v1 = vmul.f32 0.0, %v612_v20 }
  0xb7   : > { %v465_v23 = vpop.f32.mrf.mxu1  ;;  %v573_v42 = vmul.f32 0.0, %v557_v22 }
  0xb8   : > { %v515_v24 = vmul.f32 %v3459_v15, %v465_v23 }
  0xba   : > { %v525_v25 = vadd.f32 %v3463_v17, %v515_v24 }
  0xbc   : > { %v445_v28 = vpop.f32.mrf.mxu3  ;;  %v3472_v35 = vmax.f32 %v525_v25, 0.0 }
  0xbd   : > { %v3467_v27 = vpop.permute.xlu0 %617  ;;  %v514_v30 = vmul.f32 %v3459_v15, %v445_v28  ;;  %v485_v31 = vpop.f32.mrf.mxu2 }
  0xbe   : > { %v559_v29 = vpop.permute.xlu1 %558  ;;  %v516_v34 = vmul.f32 %v3459_v15, %v485_v31  ;;  %v622_v46 = vsel %vm619_vm6, %v616_v12, %v3467_v27  ;;  %v630_v48 = vmul.f32 %v621_v41, %v3472_v35  ;;  %v3493_v58 = vpop.permute.xlu2 %729 }
  0xbf   : > { %v524_v33 = vadd.f32 %v3463_v17, %v514_v30  ;;  %v565_v39 = vsel %vm564_vm7, %v557_v22, %v559_v29  ;;  %v566_v40 = vsel %vm564_vm7, %v559_v29, %v561_v13  ;;  %v740_v22 = vmul.f32 0.0, %v724_v32 }
  0xc0   : > { %v526_v38 = vadd.f32 %v3463_v17, %v516_v34  ;;  %v575_v49 = vmul.f32 %v566_v40, %v3472_v35 }
  0xc1   : > { %v3474_v36 = vmax.f32 %v524_v33, 0.0 }
  0xc2   : > { %v3480_v43 = vmax.f32 %v526_v38, 0.0 }
  0xc3   : > { %v574_v44 = vmul.f32 %v565_v39, %v3474_v36  ;;  %v629_v62 = vmul.f32 %v620_v59, %v3474_v36 }
  0xc4   : > { %v631_v52 = vmul.f32 %v622_v46, %v3480_v43  ;;  %v576_v53 = vmul.f32 %v567_v45, %v3480_v43 }
  0xc5   : > { %v672_v47 = vpop.permute.xlu0 %671  ;;  %v2737_v54 = vpack.i.bf16 %v574_v44, %v573_v42  ;;  %v2747_v7 = vpack.i.bf16 %v629_v62, %v628_v1 }
  0xc6   : > { %v668_v50 = vpop.permute.xlu1 %667  ;;  %v2752_v55 = vpack.i.bf16 %v631_v52, %v630_v48  ;;  %v2742_v56 = vpack.i.bf16 %v576_v53, %v575_v49  ;;  %v677_v63 = vsel %vm675_vm8, %v670_v21, %v672_v47  ;;  %v834_v10 = vpop.permute.xlu2 %833 }
  0xc7   : > { %2738 = vrot.lane.b32.xlu0 %v2737_v54, %s3180_s16  ;;  %v676_v57 = vsel %vm675_vm8, %v668_v50, %v670_v21  ;;  %v684_v60 = vmul.f32 0.0, %v668_v50  ;;  %v686_v4 = vmul.f32 %v677_v63, %v3472_v35 }
  0xc8   : > { %2753 = vrot.lane.b32.xlu2 %v2752_v55, %s3179_s15  ;;  %2743 = vrot.lane.b32.xlu1 %v2742_v56, %s3180_s16  ;;  %v685_v61 = vmul.f32 %v676_v57, %v3474_v36 }
  0xca   : > { %v2757_v6 = vpack.i.bf16 %v685_v61, %v684_v60  ;;  %v849_v60 = vmul.f32 0.0, %v834_v10 }
  0xcd   : > { %v726_v0 = vpop.permute.xlu0 %725 }
  0xce   : > { %v3501_v2 = vpop.permute.xlu1 %673  ;;  %v732_v9 = vsel %vm731_vm9, %v724_v32, %v726_v0  ;;  %v3522_v39 = vpop.permute.xlu2 %839 }
  0xcf   : > { %v678_v3 = vsel %vm675_vm8, %v672_v47, %v3501_v2  ;;  %v741_v13 = vmul.f32 %v732_v9, %v3474_v36 }
  0xd0   : > { %v687_v5 = vmul.f32 %v678_v3, %v3480_v43  ;;  %2758 = vrot.lane.b32.xlu2 %v2757_v6, %s3178_s27  ;;  %2748 = vrot.lane.b32.xlu1 %v2747_v7, %s3179_s15 }
  0xd1   : > { %v2767_v34 = vpack.i.bf16 %v741_v13, %v740_v22  ;;  %v505_v13 = vpop.f32.mrf.mxu3 }
  0xd2   : > { %v2762_v8 = vpack.i.bf16 %v687_v5, %v686_v4 }
  0xd4   : > { %2763 = vrot.lane.b32.xlu0 %v2762_v8, %s3178_s27 }
  0xd5   : > { %v2729_v12 = vpop.permute.xlu0 %2728 }
  0xd6   : > { %v728_v19 = vpop.permute.xlu1 %727  ;;  %v2731_v20 = vunpack.i.h.bf16 %v2729_v12  ;;  %v2730_v21 = vunpack.i.l.bf16 %v2729_v12  ;;  %v893_v55 = vpop.permute.xlu2 %892 }
  0xd7   : > { %v733_v23 = vsel %vm731_vm9, %v726_v0, %v728_v19  ;;  %v734_v24 = vsel %vm731_vm9, %v728_v19, %v3493_v58  ;;  %v517_v19 = vmul.f32 %v3459_v15, %v505_v13 }
  0xd8   : > { %v742_v25 = vmul.f32 %v733_v23, %v3472_v35  ;;  %v743_v28 = vmul.f32 %v734_v24, %v3480_v43  ;;  %v795_v29 = vmul.f32 0.0, %v2730_v21  ;;  %v787_v30 = vsel %vm786_vm10, %v2730_v21, %v2731_v20 }
  0xd9   : > { %v796_v31 = vmul.f32 %v787_v30, %v3474_v36 }
  0xda   : > { %v2772_v33 = vpack.i.bf16 %v743_v28, %v742_v25  ;;  %v527_v25 = vadd.f32 %v3463_v17, %v517_v19 }
  0xdb   : > { %v2777_v38 = vpack.i.bf16 %v796_v31, %v795_v29 }
  0xdc   : > { %2773 = vrot.lane.b32.xlu1 %v2772_v33, %s3177_s14  ;;  %2768 = vrot.lane.b32.xlu0 %v2767_v34, %s3177_s14  ;;  %v3561_v31 = vmax.f32 %v527_v25, 0.0 }
  0xdd   : > { %v836_v32 = vpop.permute.xlu0 %835  ;;  %2778 = vrot.lane.b32.xlu2 %v2777_v38, %s3176_s25 }
  0xde   : > { %v3524_v40 = vpop.permute.xlu1 %2733  ;;  %v841_v49 = vsel %vm760_vm11, %v834_v10, %v836_v32  ;;  %v944_v9 = vpop.permute.xlu2 %943  ;;  %v577_v17 = vmul.f32 %v3461_v16, %v3561_v31 }
  0xdf   : > { %v2736_v41 = vunpack.i.h.bf16 %v3524_v40  ;;  %v2735_v42 = vunpack.i.l.bf16 %v3524_v40  ;;  %v850_v56 = vmul.f32 %v841_v49, %v3474_v36 }
  0xe1   : > { %v788_v44 = vsel %vm786_vm10, %v2731_v20, %v2735_v42  ;;  %v789_v45 = vsel %vm786_vm10, %v2735_v42, %v2736_v41  ;;  %v2787_v62 = vpack.i.bf16 %v850_v56, %v849_v60  ;;  %v688_v56 = vmul.f32 %v3501_v2, %v3561_v31 }
  0xe2   : > { %v797_v46 = vmul.f32 %v788_v44, %v3472_v35  ;;  %v798_v47 = vmul.f32 %v789_v45, %v3480_v43  ;;  %v3589_v60 = vsel %vm539_vm15, 1.0, %v3171_v14  ;;  %v799_v11 = vmul.f32 %v2736_v41, %v3561_v31 }
  0xe3   : > { %v1043_v14 = vmul.f32 %v3397_v26, %v3380_v18  ;;  %vm1223_vm15 = vcmask 1039360  }
  0xe4   : > { %v2782_v48 = vpack.i.bf16 %v798_v47, %v797_v46 }
  0xe5   : > { %v889_v50 = vpop.permute.xlu0 %888  ;;  %v1047_v40 = vperm.slane %v1043_v14, 2 }
  0xe6   : > { %v838_v52 = vpop.permute.xlu1 %837  ;;  %2783 = vrot.lane.b32.xlu0 %v2782_v48, %s3176_s25  ;;  %v904_v0 = vmul.f32 0.0, %v889_v50  ;;  %v996_v29 = vpop.permute.xlu2 %995 }
  0xe7   : > { %v842_v53 = vsel %vm760_vm11, %v836_v32, %v838_v52  ;;  %v843_v54 = vsel %vm760_vm11, %v838_v52, %v3522_v39 }
  0xe8   : > { %v851_v57 = vmul.f32 %v842_v53, %v3472_v35  ;;  %v852_v59 = vmul.f32 %v843_v54, %v3480_v43 }
  0xea   : > { %v2792_v61 = vpack.i.bf16 %v852_v59, %v851_v57  ;;  %v632_v57 = vmul.f32 %v3467_v27, %v3561_v31  ;;  %v853_v59 = vmul.f32 %v3522_v39, %v3561_v31 }
  0xec   : > { %2793 = vrot.lane.b32.xlu1 %v2792_v61, %s3175_s28  ;;  %v1045_v61 = vperm.slane %v1043_v14, 0 }
  0xed   : > { %v3543_v63 = vpop.permute.xlu0 %894 }
  0xee   : > { %v891_v1 = vpop.permute.xlu1 %890  ;;  %2788 = vrot.lane.b32.xlu0 %v2787_v62, %s3175_s28  ;;  %v898_v3 = vsel %vm704_vm12, %v893_v55, %v3543_v63  ;;  %v1002_v45 = vpop.permute.xlu2 %1001  ;;  %v908_v27 = vmul.f32 %v3543_v63, %v3561_v31 }
  0xef   : > { %v896_v4 = vsel %vm704_vm12, %v889_v50, %v891_v1  ;;  %v897_v5 = vsel %vm704_vm12, %v891_v1, %v893_v55  ;;  %v907_v6 = vmul.f32 %v898_v3, %v3480_v43  ;;  %v1011_v50 = vmul.f32 0.0, %v996_v29 }
  0xf0   : > { %v905_v7 = vmul.f32 %v896_v4, %v3474_v36  ;;  %v906_v8 = vmul.f32 %v897_v5, %v3472_v35  ;;  %v744_v55 = vmul.f32 %v3493_v58, %v3561_v31  ;;  %v1700_v58 = vperm.slane %v3589_v60, 0 }
  0xf1   : > { %v1015_v39 = vmul.f32 %v1002_v45, %v3561_v31  ;;  %v1046_v3 = vperm.slane %v1043_v14, 1  ;;  %v1048_v4 = vperm.slane %v1043_v14, 3 }
  0xf2   : > { %v2797_v10 = vpack.i.bf16 %v905_v7, %v904_v0  ;;  %v2802_v12 = vpack.i.bf16 %v907_v6, %v906_v8  ;;  %v2827_v2 = vpack.i.bf16 %v1700_v58, %v799_v11 }
  0xf4   : > { %2798 = vrot.lane.b32.xlu1 %v2797_v10, %s3174_s26  ;;  %2803 = vrot.lane.b32.xlu2 %v2802_v12, %s3174_s26 }
  0xf5   : > { %v946_v21 = vpop.permute.xlu0 %945 }
  0xf6   : > { %v942_v20 = vpop.permute.xlu1 %941  ;;  %v950_v30 = vsel %vm648_vm13, %v944_v9, %v946_v21 }
  0xf7   : > { %v949_v22 = vsel %vm648_vm13, %v942_v20, %v944_v9  ;;  %v957_v23 = vmul.f32 0.0, %v942_v20  ;;  %v959_v34 = vmul.f32 %v950_v30, %v3472_v35 }
  0xf8   : > { %v958_v24 = vmul.f32 %v949_v22, %v3474_v36 }
  0xfa   : > { %v2807_v28 = vpack.i.bf16 %v958_v24, %v957_v23 }
  0xfc   : > { %2808 = vrot.lane.b32.xlu2 %v2807_v28, %s3172_s19 }
  0xfd   : > { %v998_v32 = vpop.permute.xlu0 %997 }
  0xfe   : > { %v948_v33 = vpop.permute.xlu1 %947  ;;  %v1003_v44 = vsel %vm593_vm14, %v996_v29, %v998_v32 }
  0xff   : > { %v951_v15 = vsel %vm648_vm13, %v946_v21, %v948_v33  ;;  %v1012_v46 = vmul.f32 %v1003_v44, %v3474_v36  ;;  %v961_v41 = vmul.f32 %v948_v33, %v3561_v31 }
 0x100   : > { %v960_v38 = vmul.f32 %v951_v15, %v3480_v43 }
 0x101   : > { %v2817_v54 = vpack.i.bf16 %v1012_v46, %v1011_v50 }
 0x102   : > { %v2812_v42 = vpack.i.bf16 %v960_v38, %v959_v34 }
 0x104   : > { %2813 = vrot.lane.b32.xlu0 %v2812_v42, %s3172_s19  ;;  %591 = vrot.lane.b32.xlu2 %v577_v17, %s3180_s16 }
 0x106   : > { %v1000_v47 = vpop.permute.xlu1 %999 }
 0x107   : > { %v1004_v48 = vsel %vm593_vm14, %v998_v32, %v1000_v47  ;;  %v1005_v49 = vsel %vm593_vm14, %v1000_v47, %v1002_v45 }
 0x108   : > { %v1013_v52 = vmul.f32 %v1004_v48, %v3472_v35  ;;  %v1014_v53 = vmul.f32 %v1005_v49, %v3480_v43 }
 0x10a   : > { %v2822_v16 = vpack.i.bf16 %v1014_v53, %v1013_v52 }
 0x10c   : > { %2823 = vrot.lane.b32.xlu1 %v2822_v16, %s3173_s23  ;;  %2818 = vrot.lane.b32.xlu0 %v2817_v54, %s3173_s23 }
 0x10d   : > { %758 = vrot.lane.b32.xlu2 %v744_v55, %s3177_s14 }
 0x114   : > { %702 = vrot.lane.b32.xlu1 %v688_v56, %s3178_s27  ;;  %646 = vrot.lane.b32.xlu0 %v632_v57, %s3179_s15 }
 0x115   : > { %867 = vrot.lane.b32.xlu2 %v853_v59, %s3175_s28 }
 0x11c   : > { %2828 = vrot.lane.b32.xlu1 %v2827_v2, %s3176_s25  ;;  %922 = vrot.lane.b32.xlu0 %v908_v27, %s3174_s26 }
 0x11d   : > { %1029 = vrot.lane.b32.xlu2 %v1015_v39, %s3173_s23 }
 0x122   : > { %v3609_v62 = vpop.permute.xlu2 %2753 }
 0x123   : > { %v2756_v63 = vunpack.i.h.bf16 %v3609_v62  ;;  %v2755_v0 = vunpack.i.l.bf16 %v3609_v62 }
 0x124   : > { %975 = vrot.lane.b32.xlu1 %v961_v41, %s3172_s19  ;;  %1049 = vrot.lane.b32.xlu0 %v1045_v61, %s4856_s12 }
 0x125   : > { %1053 = vrot.lane.b32.xlu2 %v1047_v40, %s4856_s12  ;;  %v3617_v1 = vsel %vm648_vm13, %v2755_v0, %v2756_v63 }
 0x126   : > { %4883 = vst [vmem:[#allocation14_spill] sm:$0xff] %v3617_v1 }
 0x12a   : > { %v3624_v10 = vpop.permute.xlu2 %2758 }
 0x12b   : > { %v4844_v22 = vunpack.i.h.bf16 %v3624_v10 }
 0x12c   : > { %1051 = vrot.lane.b32.xlu1 %v1046_v3, %s4856_s12  ;;  %1055 = vrot.lane.b32.xlu0 %v1048_v4, %s4856_s12  ;;  %s3186_s12 = smov 7  }
 0x137   : > { %v3638_v23 = vpop.permute.xlu2 %2778 }
 0x138   : > { %v4846_v50 = vunpack.i.h.bf16 %v3638_v23 }
 0x139   : > { %v3621_v5 = vpop.permute.xlu0 %2738 }
 0x13a   : > { %v4842_v6 = vunpack.i.h.bf16 %v3621_v5  ;;  %v2744_v7 = vpop.permute.xlu1 %2743 }
 0x13b   : > { %v2746_v8 = vunpack.i.h.bf16 %v2744_v7  ;;  %v2745_v9 = vunpack.i.l.bf16 %v2744_v7 }
 0x13d   : > { %v3629_v12 = vsel %vm593_vm14, %v4842_v6, %v2745_v9  ;;  %v3632_v13 = vsel %vm593_vm14, %v2745_v9, %v2746_v8 }
 0x13e   : > { %4884 = vst [vmem:[#allocation15_spill] sm:$0xff] %v3632_v13 }
 0x142   : > { %v3634_v19 = vpop.permute.xlu1 %2748 }
 0x143   : > { %v4843_v20 = vunpack.i.h.bf16 %v3634_v19 }
 0x145   : > { %v3643_v28 = vsel %vm648_vm13, %v4843_v20, %v2755_v0 }
 0x146   : > { %v2764_v21 = vpop.permute.xlu0 %2763 }
 0x147   : > { %v2766_v24 = vunpack.i.h.bf16 %v2764_v21  ;;  %v2765_v25 = vunpack.i.l.bf16 %v2764_v21 }
 0x149   : > { %v3648_v29 = vsel %vm704_vm12, %v4844_v22, %v2765_v25  ;;  %v3651_v30 = vsel %vm704_vm12, %v2765_v25, %v2766_v24 }
 0x14a   : > { %4885 = vst [vmem:[#allocation16_spill] sm:$0xff] %v3651_v30 }
 0x14e   : > { %v2774_v33 = vpop.permute.xlu1 %2773  ;;  %v3653_v15 = vpop.permute.xlu0 %2768 }
 0x14f   : > { %v2776_v34 = vunpack.i.h.bf16 %v2774_v33  ;;  %v2775_v38 = vunpack.i.l.bf16 %v2774_v33  ;;  %v4845_v32 = vunpack.i.h.bf16 %v3653_v15  ;;  %v2804_v42 = vpop.permute.xlu2 %2803 }
 0x150   : > { %v2806_v17 = vunpack.i.h.bf16 %v2804_v42  ;;  %v2805_v44 = vunpack.i.l.bf16 %v2804_v42 }
 0x151   : > { %v3659_v45 = vsel %vm760_vm11, %v4845_v32, %v2775_v38  ;;  %v3662_v46 = vsel %vm760_vm11, %v2775_v38, %v2776_v34 }
 0x152   : > { %4886 = vst [vmem:[#allocation17_spill] sm:$0xff] %v3662_v46  ;;  %v3665_v47 = vsel %vm675_vm8, %v2805_v44, %v2806_v17 }
 0x153   : > { %4887 = vst [vmem:[#allocation18_spill] sm:$0xff] %v3665_v47 }
 0x157   : > { %v3667_v48 = vpop.permute.xlu2 %2808 }
 0x158   : > { %v2784_v49 = vpop.permute.xlu0 %2783 }
 0x159   : > { %v2786_v52 = vunpack.i.h.bf16 %v2784_v49  ;;  %v2785_v53 = vunpack.i.l.bf16 %v2784_v49 }
 0x15b   : > { %v3673_v16 = vsel %vm786_vm10, %v4846_v50, %v2785_v53  ;;  %v3676_v54 = vsel %vm786_vm10, %v2785_v53, %v2786_v52 }
 0x15c   : > { %4888 = vst [vmem:[#allocation19_spill] sm:$0xff] %v3676_v54 }
 0x15e   : > { %v2794_v55 = vpop.permute.xlu1 %2793 }
 0x15f   : > { %v2796_v56 = vunpack.i.h.bf16 %v2794_v55  ;;  %v2795_v57 = vunpack.i.l.bf16 %v2794_v55  ;;  %v592_v59 = vpop.permute.xlu2 %591 }
 0x160   : > { %v3678_v11 = vpop.permute.xlu0 %2788  ;;  %v3681_v58 = vsel %vm593_vm14, %v2746_v8, %v592_v59  ;;  %v4853_v8 = vunpack.i.h.bf16 %v3667_v48 }
 0x161   : > { %4889 = vst [vmem:[#allocation20_spill] sm:$0xff] %v3681_v58  ;;  %v4851_v27 = vunpack.i.h.bf16 %v3678_v11  ;;  %v3685_v2 = vsel %vm731_vm9, %v2795_v57, %v2796_v56 }
 0x162   : > { %4890 = vst [vmem:[#allocation21_spill] sm:$0xff] %v3685_v2 }
 0x163   : > { %v3690_v39 = vsel %vm731_vm9, %v4851_v27, %v2795_v57 }
 0x166   : > { %v3692_v14 = vpop.permute.xlu1 %2798 }
 0x167   : > { %v4852_v61 = vunpack.i.h.bf16 %v3692_v14  ;;  %v759_v40 = vpop.permute.xlu2 %758 }
 0x168   : > { %v3696_v41 = vsel %vm760_vm11, %v2776_v34, %v759_v40 }
 0x169   : > { %4891 = vst [vmem:[#allocation22_spill] sm:$0xff] %v3696_v41  ;;  %v3701_v0 = vsel %vm675_vm8, %v4852_v61, %v2805_v44 }
 0x16f   : > { %v868_v3 = vpop.permute.xlu2 %867 }
 0x170   : > { %v3704_v4 = vsel %vm731_vm9, %v2796_v56, %v868_v3 }
 0x171   : > { %4892 = vst [vmem:[#allocation23_spill] sm:$0xff] %v3704_v4 }
 0x176   : > { %v2814_v7 = vpop.permute.xlu0 %2813 }
 0x177   : > { %v2816_v9 = vunpack.i.h.bf16 %v2814_v7  ;;  %v2815_v21 = vunpack.i.l.bf16 %v2814_v7  ;;  %v1030_v53 = vpop.permute.xlu2 %1029 }
 0x179   : > { %v3710_v25 = vsel %vm619_vm6, %v4853_v8, %v2815_v21  ;;  %v3713_v33 = vsel %vm619_vm6, %v2815_v21, %v2816_v9 }
 0x17a   : > { %4893 = vst [vmem:[#allocation24_spill] sm:$0xff] %v3713_v33 }
 0x17e   : > { %v2824_v34 = vpop.permute.xlu1 %2823  ;;  %v3715_v38 = vpop.permute.xlu0 %2818 }
 0x17f   : > { %v2826_v42 = vunpack.i.h.bf16 %v2824_v34  ;;  %v2825_v44 = vunpack.i.l.bf16 %v2824_v34  ;;  %v4854_v49 = vunpack.i.h.bf16 %v3715_v38  ;;  %v1054_v62 = vpop.permute.xlu2 %1053 }
 0x181   : > { %v3721_v55 = vsel %vm564_vm7, %v4854_v49, %v2825_v44  ;;  %v3724_v56 = vsel %vm564_vm7, %v2826_v42, %v1030_v53  ;;  %v3727_v57 = vsel %vm564_vm7, %v2825_v44, %v2826_v42 }
 0x182   : > { %4894 = vst [vmem:[#allocation25_spill] sm:$0xff] %v3724_v56 }
 0x183   : > { %4895 = vst [vmem:[#allocation26_spill] sm:$0xff] %v3727_v57 }
 0x186   : > { %v703_v59 = vpop.permute.xlu1 %702  ;;  %v647_v40 = vpop.permute.xlu0 %646 }
 0x187   : > { %v3730_v3 = vsel %vm704_vm12, %v2766_v24, %v703_v59  ;;  %v3735_v7 = vsel %vm648_vm13, %v2756_v63, %v647_v40 }
 0x188   : > { %4896 = vst [vmem:[#allocation27_spill] sm:$0xff] %v3730_v3 }
 0x189   : > { %4897 = vst [vmem:[#allocation28_spill] sm:$0xff] %v3735_v7 }
 0x18e   : > { %v3737_v21 = vpop.permute.xlu1 %2828  ;;  %v923_v34 = vpop.permute.xlu0 %922 }
 0x18f   : > { %v2830_v6 = vunpack.i.l.bf16 %v3737_v21  ;;  %v3741_v53 = vsel %vm675_vm8, %v2806_v17, %v923_v34 }
 0x190   : > { %4898 = vst [vmem:[#allocation29_spill] sm:$0xff] %v3741_v53 }
 0x191   : > { %v3744_v42 = vsel %vm786_vm10, %v2786_v52, %v2830_v6 }
 0x192   : > { %4899 = vst [vmem:[#allocation30_spill] sm:$0xff] %v3744_v42 }
 0x196   : > { %v976_v44 = vpop.permute.xlu1 %975  ;;  %v1050_v20 = vpop.permute.xlu0 %1049 }
 0x197   : > { %v3747_v24 = vsel %vm619_vm6, %v2816_v9, %v976_v44  ;;  %v1066_v63 = vmul.f32 0.0, %v1050_v20 }
 0x198   : > { %4900 = vst [vmem:[#allocation31_spill] sm:$0xff] %v3747_v24 }
 0x19e   : > { %v1052_v59 = vpop.permute.xlu1 %1051  ;;  %v1056_v40 = vpop.permute.xlu0 %1055 }
 0x19f   : > { %v1058_v22 = vsel %vm1057_vm0, %v1050_v20, %v1052_v59  ;;  %v1070_v32 = vmul.f32 %v1056_v40, %v3561_v31  ;;  %v1059_v17 = vsel %vm1057_vm0, %v1052_v59, %v1054_v62  ;;  %v1060_v34 = vsel %vm1057_vm0, %v1054_v62, %v1056_v40 }
 0x1a0   : > { %v1067_v6 = vmul.f32 %v1058_v22, %v3474_v36  ;;  %v1068_v52 = vmul.f32 %v1059_v17, %v3472_v35  ;;  %v1069_v9 = vmul.f32 %v1060_v34, %v3480_v43  ;;  %v1100_v20 = vperm.slane %v3380_v18, 0 }
 0x1a1   : > { %1084 = vrot.lane.b32.xlu0 %v1070_v32, %s3182_s24  ;;  %v1101_v59 = vperm.slane %v3380_v18, 1  ;;  %v1102_v62 = vperm.slane %v3380_v18, 2  ;;  %v1103_v22 = vperm.slane %v3380_v18, 3 }
 0x1a2   : > { %v2832_v44 = vpack.i.bf16 %v1067_v6, %v1066_v63  ;;  %v2837_v50 = vpack.i.bf16 %v1069_v9, %v1068_v52  ;;  %v1377_v9 = vperm.slane %v3430_v51, 0 }
 0x1a3   : > { %v2842_v40 = vpack.i.bf16 %v1101_v59, %v1100_v20  ;;  %v2847_v17 = vpack.i.bf16 %v1103_v22, %v1102_v62  ;;  %v1154_v59 = vmul.f32 %v3411_v37, %v3380_v18 }
 0x1a4   : > { %2833 = vrot.lane.b32.xlu1 %v2832_v44, %s3182_s24  ;;  %2838 = vrot.lane.b32.xlu2 %v2837_v50, %s3182_s24 }
 0x1a5   : > { %v1158_v22 = vperm.slane %v1154_v59, 2 }
 0x1ac   : > { %2843 = vrot.lane.b32.xlu1 %v2842_v40, %s4848_s30  ;;  %2848 = vrot.lane.b32.xlu2 %v2847_v17, %s4848_s30  ;;  %s4859_s30 = smov 121  }
 0x1fe   : > { %v3765_v32 = vpop.permute.xlu2 %2838 }
 0x1ff   : > { %4901 = vst [vmem:[#allocation32_spill] sm:$0xff] %v3765_v32  ;;  %v4850_v50 = vunpack.i.h.bf16 %v3765_v32  ;;  %v2840_v63 = vunpack.i.l.bf16 %v3765_v32 }
 0x201   : > { %v3772_v34 = vsel %vm1086_vm1, %v2840_v63, %v4850_v50 }
 0x202   : > { %4902 = vst [vmem:[#allocation33_spill] sm:$0xff] %v3772_v34 }
 0x206   : > { %v2849_v6 = vpop.permute.xlu2 %2848 }
 0x207   : > { %v2851_v52 = vunpack.i.h.bf16 %v2849_v6 }
 0x209   : > { %v1125_v44 = vmul.f32 %v2851_v52, %v3561_v31 }
 0x20b   : > { %v2862_v20 = vpack.i.bf16 %v1377_v9, %v1125_v44  ;;  %v2850_v9 = vunpack.i.l.bf16 %v2849_v6  ;;  %v1156_v6 = vperm.slane %v1154_v59, 0 }
 0x20d   : > { %2863 = vrot.lane.b32.xlu2 %v2862_v20, %s4861_s17  ;;  %v1115_v20 = vsel %vm4869_vm2, %v2850_v9, %v2851_v52  ;;  %v1157_v52 = vperm.slane %v1154_v59, 1 }
 0x20e   : > { %v1124_v1 = vmul.f32 %v1115_v20, %v3480_v43 }
 0x215   : > { %1164 = vrot.lane.b32.xlu2 %v1158_v22, %s4859_s30 }
 0x216   : > { %v3779_v62 = vpop.permute.xlu1 %2833 }
 0x217   : > { %v4855_v40 = vunpack.i.h.bf16 %v3779_v62 }
 0x219   : > { %v3786_v17 = vsel %vm1086_vm1, %v4855_v40, %v2840_v63 }
 0x21e   : > { %v2844_v44 = vpop.permute.xlu1 %2843 }
 0x21f   : > { %v2846_v50 = vunpack.i.h.bf16 %v2844_v44  ;;  %v2845_v27 = vunpack.i.l.bf16 %v2844_v44 }
 0x221   : > { %v1113_v61 = vsel %vm4869_vm2, %v2845_v27, %v2846_v50  ;;  %v1114_v8 = vsel %vm4869_vm2, %v2846_v50, %v2850_v9  ;;  %v1121_v49 = vmul.f32 0.0, %v2845_v27  ;;  %v1159_v50 = vperm.slane %v1154_v59, 3  ;;  %v3799_v27 = vpop.permute.xlu0 %1084 }
 0x222   : > { %v1122_v13 = vmul.f32 %v1113_v61, %v3474_v36  ;;  %v1123_v22 = vmul.f32 %v1114_v8, %v3472_v35  ;;  %4903 = vst [vmem:[#allocation34_spill] sm:$0xff] %v3799_v27  ;;  %vm1252_vm2 = vcmask 7168  }
 0x224   : > { %v2852_v63 = vpack.i.bf16 %v1122_v13, %v1121_v49  ;;  %v2857_v40 = vpack.i.bf16 %v1124_v1, %v1123_v22 }
 0x226   : > { %2853 = vrot.lane.b32.xlu0 %v2852_v63, %s4861_s17  ;;  %2858 = vrot.lane.b32.xlu1 %v2857_v40, %s4861_s17  ;;  %s3188_s17 = smov 1  }
 0x22e   : > { %1160 = vrot.lane.b32.xlu0 %v1156_v6, %s4859_s30  ;;  %1162 = vrot.lane.b32.xlu1 %v1157_v52, %s4859_s30 }
 0x236   : > { %1166 = vrot.lane.b32.xlu0 %v1159_v50, %s4859_s30  ;;  %s4864_s30 = smov 127  }
 0x267   : > { %v3801_v61 = vpop.permute.xlu2 %2863 }
 0x268   : > { %v2865_v9 = vunpack.i.l.bf16 %v3801_v61 }
 0x298   : > { %v3803_v8 = vpop.permute.xlu0 %2853  ;;  %v2859_v1 = vpop.permute.xlu1 %2858 }
 0x299   : > { %v4858_v13 = vunpack.i.h.bf16 %v3803_v8  ;;  %v2861_v49 = vunpack.i.h.bf16 %v2859_v1  ;;  %v2860_v40 = vunpack.i.l.bf16 %v2859_v1  ;;  %v1165_v1 = vpop.permute.xlu2 %1164 }
 0x29b   : > { %v3810_v59 = vsel %vm1141_vm3, %v4858_v13, %v2860_v40  ;;  %v3813_v44 = vsel %vm1141_vm3, %v2861_v49, %v2865_v9  ;;  %v3816_v20 = vsel %vm1141_vm3, %v2860_v40, %v2861_v49  ;;  %v1211_v13 = vperm.slane %v3397_v26, 0 }
 0x29c   : > { %4904 = vst [vmem:[#allocation35_spill] sm:$0xff] %v3813_v44  ;;  %v1212_v9 = vperm.slane %v3397_v26, 1 }
 0x29d   : > { %4905 = vst [vmem:[#allocation36_spill] sm:$0xff] %v3816_v20 }
 0x29e   : > { %v2877_v2 = vpack.i.bf16 %v1212_v9, %v1211_v13  ;;  %v1271_v13 = vperm.slane %v3411_v37, 1 }
 0x2a0   : > { %v1161_v22 = vpop.permute.xlu0 %1160  ;;  %v1163_v63 = vpop.permute.xlu1 %1162 }
 0x2a1   : > { %v1177_v6 = vmul.f32 0.0, %v1161_v22  ;;  %v1169_v52 = vsel %vm1168_vm4, %v1161_v22, %v1163_v63  ;;  %v1170_v49 = vsel %vm1168_vm4, %v1163_v63, %v1165_v1  ;;  %v1214_v63 = vperm.slane %v3397_v26, 3 }
 0x2a2   : > { %v1178_v50 = vmul.f32 %v1169_v52, %v3474_v36  ;;  %v1179_v22 = vmul.f32 %v1170_v49, %v3472_v35  ;;  %v3845_v49 = vmul.f32 %v3430_v51, %v3589_v60 }
 0x2a4   : > { %v2867_v30 = vpack.i.bf16 %v1178_v50, %v1177_v6  ;;  %v3835_v50 = vmul.f32 %v3397_v26, %v3430_v51 }
 0x2a6   : > { %2868 = vrot.lane.b32.xlu1 %v2867_v30, %s3186_s12  ;;  %v1213_v30 = vperm.slane %v3397_v26, 2  ;;  %v1326_v41 = vperm.slane %v3835_v50, 2 }
 0x2a8   : > { %v1167_v40 = vpop.permute.xlu0 %1166 }
 0x2a9   : > { %v1171_v46 = vsel %vm1168_vm4, %v1165_v1, %v1167_v40  ;;  %v1181_v54 = vmul.f32 %v1167_v40, %v3561_v31  ;;  %v2882_v1 = vpack.i.bf16 %v1214_v63, %v1213_v30  ;;  %v1272_v40 = vperm.slane %v3411_v37, 2 }
 0x2aa   : > { %v1180_v52 = vmul.f32 %v1171_v46, %v3480_v43  ;;  %v1324_v46 = vperm.slane %v3835_v50, 0 }
 0x2ab   : > { %1195 = vrot.lane.b32.xlu0 %v1181_v54, %s3186_s12  ;;  %v1270_v54 = vperm.slane %v3411_v37, 0 }
 0x2ac   : > { %v2872_v6 = vpack.i.bf16 %v1180_v52, %v1179_v22  ;;  %v1273_v22 = vperm.slane %v3411_v37, 3  ;;  %v3853_v52 = vmul.f32 %v3845_v49, %v3411_v37 }
 0x2ad   : > { %v2892_v9 = vpack.i.bf16 %v1271_v13, %v1270_v54  ;;  %v1864_v54 = vperm.slane %v3845_v49, 2 }
 0x2ae   : > { %2873 = vrot.lane.b32.xlu2 %v2872_v6, %s3186_s12  ;;  %2878 = vrot.lane.b32.xlu1 %v2877_v2, %s4864_s30  ;;  %v1325_v2 = vperm.slane %v3835_v50, 1  ;;  %v2897_v6 = vpack.i.bf16 %v1273_v22, %v1272_v40  ;;  %v1917_v30 = vperm.slane %v3853_v52, 1  ;;  %v1918_v63 = vperm.slane %v3853_v52, 2 }
 0x2af   : > { %v1701_v22 = vperm.slane %v3589_v60, 1 }
 0x2b6   : > { %2883 = vrot.lane.b32.xlu2 %v2882_v1, %s4864_s30  ;;  %1328 = vrot.lane.b32.xlu1 %v1324_v46, %s3186_s12  ;;  %v1863_v1 = vperm.slane %v3845_v49, 1  ;;  %v3864_v46 = vmul.f32 %v3845_v49, %v3397_v26  ;;  %s4908_s30 = smov 8  }
 0x2b8   : > { %v1809_v13 = vperm.slane %v3864_v46, 0 }
 0x2be   : > { %1330 = vrot.lane.b32.xlu2 %v1325_v2, %s3186_s12  ;;  %2893 = vrot.lane.b32.xlu1 %v2892_v9, %s3188_s17  ;;  %v3872_v2 = vmul.f32 %v3411_v37, %v3589_v60  ;;  %v1810_v9 = vperm.slane %v3864_v46, 1 }
 0x2c0   : > { %v1754_v40 = vperm.slane %v3872_v2, 0 }
 0x2c6   : > { %2898 = vrot.lane.b32.xlu2 %v2897_v6, %s3188_s17  ;;  %1922 = vrot.lane.b32.xlu1 %v1917_v30, %s3180_s16  ;;  %v1702_v6 = vperm.slane %v3589_v60, 2  ;;  %v1755_v30 = vperm.slane %v3872_v2, 1 }
 0x2ce   : > { %1924 = vrot.lane.b32.xlu2 %v1918_v63, %s3180_s16  ;;  %1868 = vrot.lane.b32.xlu1 %v1863_v1, %s3179_s15  ;;  %v2902_v63 = vpack.i.bf16 %v1702_v6, %v1701_v22  ;;  %v3885_v1 = vmul.f32 %v3397_v26, %v3589_v60 }
 0x2d0   : > { %v1649_v22 = vperm.slane %v3885_v1, 2 }
 0x2d6   : > { %1870 = vrot.lane.b32.xlu2 %v1864_v54, %s3179_s15  ;;  %1813 = vrot.lane.b32.xlu1 %v1809_v13, %s3178_s27  ;;  %v1919_v54 = vperm.slane %v3853_v52, 3  ;;  %v1648_v13 = vperm.slane %v3885_v1, 1 }
 0x2de   : > { %1815 = vrot.lane.b32.xlu2 %v1810_v9, %s3178_s27  ;;  %1758 = vrot.lane.b32.xlu1 %v1754_v40, %s3177_s14  ;;  %v3891_v9 = vmul.f32 %v3380_v18, %v3589_v60  ;;  %v1812_v18 = vperm.slane %v3864_v46, 3 }
 0x2e0   : > { %v3897_v40 = vmul.f32 %v3891_v9, %v3411_v37  ;;  %v1542_v7 = vperm.slane %v3891_v9, 3 }
 0x2e2   : > { %v1593_v6 = vperm.slane %v3897_v40, 0 }
 0x2e6   : > { %1760 = vrot.lane.b32.xlu2 %v1755_v30, %s3177_s14  ;;  %2903 = vrot.lane.b32.xlu1 %v2902_v63, %s3176_s25  ;;  %v1594_v30 = vperm.slane %v3897_v40, 1  ;;  %v1539_v63 = vperm.slane %v3891_v9, 0 }
 0x2ee   : > { %1926 = vrot.lane.b32.xlu2 %v1919_v54, %s3180_s16  ;;  %1653 = vrot.lane.b32.xlu1 %v1648_v13, %s3175_s28  ;;  %v1541_v54 = vperm.slane %v3891_v9, 2  ;;  %v3913_v13 = vmul.f32 %v3891_v9, %v3397_v26  ;;  %v3930_v26 = vmul.f32 %v3411_v37, %v3430_v51 }
 0x2f0   : > { %v1487_v47 = vperm.slane %v3913_v13, 1  ;;  %v1431_v33 = vperm.slane %v3930_v26, 0 }
 0x2f6   : > { %1655 = vrot.lane.b32.xlu2 %v1649_v22, %s3175_s28  ;;  %1597 = vrot.lane.b32.xlu1 %v1593_v6, %s3174_s26 }
 0x2fe   : > { %1599 = vrot.lane.b32.xlu2 %v1594_v30, %s3174_s26  ;;  %1819 = vrot.lane.b32.xlu1 %v1812_v18, %s3178_s27  ;;  %v1757_v18 = vperm.slane %v3872_v2, 3 }
 0x306   : > { %1543 = vrot.lane.b32.xlu2 %v1539_v63, %s3172_s19  ;;  %1547 = vrot.lane.b32.xlu1 %v1541_v54, %s3172_s19  ;;  %v1488_v54 = vperm.slane %v3913_v13, 2 }
 0x308   : > { %v3915_v22 = vpop.permute.xlu2 %2873 }
 0x309   : > { %4906 = vst [vmem:[#allocation37_spill] sm:$0xff] %v3915_v22  ;;  %v4863_v6 = vunpack.i.h.bf16 %v3915_v22  ;;  %v2875_v30 = vunpack.i.l.bf16 %v3915_v22 }
 0x30b   : > { %v3924_v63 = vsel %vm1197_vm5, %v2875_v30, %v4863_v6 }
 0x30c   : > { %4907 = vst [vmem:[#allocation38_spill] sm:$0xff] %v3924_v63 }
 0x30e   : > { %1764 = vrot.lane.b32.xlu2 %v1757_v18, %s3177_s14  ;;  %1492 = vrot.lane.b32.xlu1 %v1487_v47, %s3173_s23  ;;  %v1432_v18 = vperm.slane %v3930_v26, 1  ;;  %v1650_v47 = vperm.slane %v3885_v1, 3 }
 0x316   : > { %1494 = vrot.lane.b32.xlu2 %v1488_v54, %s3173_s23  ;;  %1435 = vrot.lane.b32.xlu1 %v1431_v33, %s3182_s24  ;;  %v1378_v54 = vperm.slane %v3430_v51, 1  ;;  %v1379_v33 = vperm.slane %v3430_v51, 2 }
 0x318   : > { %v3936_v57 = vpop.permute.xlu1 %2868  ;;  %v2912_v58 = vpack.i.bf16 %v1379_v33, %v1378_v54  ;;  %v1489_v54 = vperm.slane %v3913_v13, 3  ;;  %v1380_v33 = vperm.slane %v3430_v51, 3  ;;  %v1327_v51 = vperm.slane %v3835_v50, 3 }
 0x319   : > { %v4866_v6 = vunpack.i.h.bf16 %v3936_v57 }
 0x31b   : > { %v3944_v37 = vsel %vm1197_vm5, %v4866_v6, %v2875_v30 }
 0x31d   : > { %v4026_v42 = vpop.permute.xlu0 %1195 }
 0x31e   : > { %1437 = vrot.lane.b32.xlu2 %v1432_v18, %s3182_s24  ;;  %1657 = vrot.lane.b32.xlu1 %v1650_v47, %s3175_s28 }
 0x320   : > { %v3950_v34 = vpop.permute.xlu1 %2878 }
 0x321   : > { %v4867_v20 = vunpack.i.h.bf16 %v3950_v34  ;;  %v2880_v63 = vunpack.i.l.bf16 %v3950_v34  ;;  %v4909_v44 = vunpack.i.h.bf16 %v3950_v34 }
 0x323   : > { %v1224_v30 = vsel %vm1223_vm15, %v2880_v63, %v4867_v20  ;;  %v1232_v18 = vmul.f32 0.0, %v2880_v63 }
 0x324   : > { %v1233_v47 = vmul.f32 %v1224_v30, %v3474_v36 }
 0x326   : > { %2913 = vrot.lane.b32.xlu2 %v2912_v58, %s4908_s30  ;;  %1549 = vrot.lane.b32.xlu1 %v1542_v7, %s3172_s19  ;;  %v2887_v6 = vpack.i.bf16 %v1233_v47, %v1232_v18  ;;  %v1916_v58 = vperm.slane %v3853_v52, 0  ;;  %v1756_v52 = vperm.slane %v3872_v2, 2  ;;  %v1865_v2 = vperm.slane %v3845_v49, 3 }
 0x328   : > { %v3961_v3 = vpop.permute.xlu1 %1328  ;;  %2888 = vrot.lane.b32.xlu0 %v2887_v6, %s3188_s17  ;;  %v1862_v6 = vperm.slane %v3845_v49, 0 }
 0x32e   : > { %1496 = vrot.lane.b32.xlu2 %v1489_v54, %s3173_s23  ;;  %1387 = vrot.lane.b32.xlu1 %v1380_v33, %s4908_s30  ;;  %s2656_s30 = sshll.u32 %s3272_s21, 7  ;;  %s2527_s21 = scalar_lea.sflag [#allocation5], %s3337_s22 }
 0x330   : > { %v3969_v63 = vpop.permute.xlu1 %2893  ;;  %1332 = vrot.lane.b32.xlu0 %v1326_v41, %s3186_s12  ;;  %v1811_v41 = vperm.slane %v3864_v46, 2  ;;  %v1647_v46 = vperm.slane %v3885_v1, 0  ;;  %v1486_v1 = vperm.slane %v3913_v13, 0  ;;  %v1433_v13 = vperm.slane %v3930_v26, 2 }
 0x338   : > { %v3973_v7 = vpop.permute.xlu1 %1922  ;;  %1920 = vrot.lane.b32.xlu0 %v1916_v58, %s3180_s16 }
 0x340   : > { %v3977_v30 = vpop.permute.xlu1 %1868  ;;  %1866 = vrot.lane.b32.xlu0 %v1862_v6, %s3179_s15  ;;  %v4001_v6 = vpop.permute.xlu2 %2883 }
 0x341   : > { %v2885_v32 = vunpack.i.l.bf16 %v4001_v6 }
 0x343   : > { %v1225_v22 = vsel %vm1223_vm15, %v4909_v44, %v2885_v32 }
 0x348   : > { %v3981_v18 = vpop.permute.xlu1 %1813  ;;  %1334 = vrot.lane.b32.xlu0 %v1327_v51, %s3186_s12  ;;  %v1595_v51 = vperm.slane %v3897_v40, 2  ;;  %s4910_s12 = smov 127  }
 0x350   : > { %v3985_v47 = vpop.permute.xlu1 %1758  ;;  %1817 = vrot.lane.b32.xlu0 %v1811_v41, %s3178_s27  ;;  %v1331_v41 = vpop.permute.xlu2 %1330 }
 0x358   : > { %v3989_v54 = vpop.permute.xlu1 %2903  ;;  %1762 = vrot.lane.b32.xlu0 %v1756_v52, %s3177_s14  ;;  %v1540_v52 = vperm.slane %v3891_v9, 1  ;;  %v4008_v20 = vpop.permute.xlu2 %2898 }
 0x359   : > { %v4868_v33 = vunpack.i.h.bf16 %v3989_v54  ;;  %v2905_v50 = vunpack.i.l.bf16 %v3989_v54 }
 0x35b   : > { %v3997_v58 = vsel %vm786_vm10, %v2905_v50, %v4868_v33 }
 0x360   : > { %1651 = vrot.lane.b32.xlu0 %v1647_v46, %s3175_s28  ;;  %v4870_v46 = vunpack.i.h.bf16 %v3737_v21 }
 0x362   : > { %v1712_v49 = vsel %vm786_vm10, %v4870_v46, %v2905_v50  ;;  %v1596_v50 = vperm.slane %v3897_v40, 3 }
 0x363   : > { %v1721_v9 = vmul.f32 %v1712_v49, %v3472_v35  ;;  %v2896_v49 = vunpack.i.h.bf16 %v3969_v63 }
 0x368   : > { %1872 = vrot.lane.b32.xlu0 %v1865_v2, %s3179_s15  ;;  %v4017_v2 = vpop.permute.xlu2 %1924 }
 0x370   : > { %1601 = vrot.lane.b32.xlu0 %v1595_v51, %s3174_s26  ;;  %v1703_v51 = vperm.slane %v3589_v60, 3 }
 0x372   : > { %v2907_v33 = vpack.i.bf16 %v1721_v9, %v1703_v51  ;;  %v1434_v51 = vperm.slane %v3930_v26, 3  ;;  %v2900_v9 = vunpack.i.l.bf16 %v4008_v20 }
 0x378   : > { %1545 = vrot.lane.b32.xlu0 %v1540_v52, %s3172_s19  ;;  %v4022_v52 = vpop.permute.xlu2 %1870 }
 0x380   : > { %1490 = vrot.lane.b32.xlu0 %v1486_v1, %s3173_s23  ;;  %v4029_v1 = vpop.permute.xlu2 %1815 }
 0x388   : > { %2908 = vrot.lane.b32.xlu0 %v2907_v33, %s3176_s25  ;;  %v2895_v33 = vunpack.i.l.bf16 %v3969_v63  ;;  %v4040_v40 = vpop.permute.xlu2 %1760 }
 0x38a   : > { %v1282_v46 = vsel %vm1252_vm2, %v2895_v33, %v2896_v49 }
 0x38b   : > { %v1291_v53 = vmul.f32 %v1282_v46, %v3472_v35  ;;  %v1929_v46 = vsel %vm593_vm14, %v3973_v7, %v4017_v2 }
 0x38c   : > { %v1938_v34 = vmul.f32 %v1929_v46, %v3480_v43 }
 0x390   : > { %1439 = vrot.lane.b32.xlu0 %v1433_v13, %s3182_s24  ;;  %v1283_v13 = vsel %vm1252_vm2, %v2896_v49, %v2900_v9  ;;  %v2886_v49 = vunpack.i.h.bf16 %v4001_v6 }
 0x391   : > { %v1292_v63 = vmul.f32 %v1283_v13, %v3480_v43  ;;  %v4063_v13 = vpop.permute.xlu2 %1926 }
 0x393   : > { %v2922_v27 = vpack.i.bf16 %v1292_v63, %v1291_v53 }
 0x398   : > { %1603 = vrot.lane.b32.xlu0 %v1596_v50, %s3174_s26  ;;  %v1336_v50 = vsel %vm1197_vm5, %v3961_v3, %v1331_v41 }
 0x399   : > { %v1345_v24 = vmul.f32 %v1336_v50, %v3472_v35 }
 0x39a   : > { %v4032_v60 = vpop.permute.xlu0 %2888 }
 0x3a0   : > { %1441 = vrot.lane.b32.xlu0 %v1434_v51, %s3182_s24  ;;  %s4911_s24 = smov 121  }
 0x3a2   : > { %v1333_v4 = vpop.permute.xlu0 %1332 }
 0x3a3   : > { %v1337_v26 = vsel %vm1197_vm5, %v1331_v41, %v1333_v4  ;;  %v1226_v41 = vsel %vm1223_vm15, %v2885_v32, %v2886_v49  ;;  %v2901_v32 = vunpack.i.h.bf16 %v4008_v20 }
 0x3a4   : > { %v1346_v56 = vmul.f32 %v1337_v26, %v3480_v43  ;;  %v1235_v44 = vmul.f32 %v1226_v41, %v3480_v43 }
 0x3a5   : > { %v1284_v26 = vsel %vm1252_vm2, %v2900_v9, %v2901_v32 }
 0x3a6   : > { %v2917_v51 = vpack.i.bf16 %v1346_v56, %v1345_v24  ;;  %v1234_v56 = vmul.f32 %v1225_v22, %v3472_v35  ;;  %v1875_v22 = vsel %vm648_vm13, %v3977_v30, %v4022_v52 }
 0x3a7   : > { %v1884_v20 = vmul.f32 %v1875_v22, %v3480_v43 }
 0x3a8   : > { %2923 = vrot.lane.b32.xlu0 %v2922_v27, %s4910_s12  ;;  %2918 = vrot.lane.b32.xlu2 %v2917_v51, %s4911_s24  ;;  %v2932_v50 = vpack.i.bf16 %v1235_v44, %v1234_v56  ;;  %v1654_v51 = vpop.permute.xlu1 %1653  ;;  %v4082_v56 = vpop.permute.xlu2 %1655 }
 0x3aa   : > { %v1921_v53 = vpop.permute.xlu0 %1920 }
 0x3ab   : > { %v1928_v24 = vsel %vm593_vm14, %v1921_v53, %v3973_v7  ;;  %v1290_v7 = vmul.f32 %v2895_v33, %v3474_v36  ;;  %v1930_v33 = vsel %vm593_vm14, %v4017_v2, %v4063_v13 }
 0x3ac   : > { %v1937_v27 = vmul.f32 %v1928_v24, %v3472_v35 }
 0x3ae   : > { %v2927_v63 = vpack.i.bf16 %v1938_v34, %v1937_v27  ;;  %v1293_v34 = vmul.f32 %v1284_v26, %v3561_v31  ;;  %v1939_v26 = vmul.f32 %v1930_v33, %v3561_v31 }
 0x3b0   : > { %2933 = vrot.lane.b32.xlu2 %v2932_v50, %s3188_s17  ;;  %2928 = vrot.lane.b32.xlu1 %v2927_v63, %s3173_s23  ;;  %v2947_v9 = vpack.i.bf16 %v1293_v34, %v1290_v7  ;;  %v1344_v63 = vmul.f32 %v3961_v3, %v3474_v36  ;;  %v4096_v22 = vpop.permute.xlu1 %1597 }
 0x3b2   : > { %v1867_v46 = vpop.permute.xlu0 %1866 }
 0x3b3   : > { %v1874_v41 = vsel %vm648_vm13, %v1867_v46, %v3977_v30  ;;  %v1936_v30 = vmul.f32 %v1921_v53, %v3474_v36 }
 0x3b4   : > { %v1883_v24 = vmul.f32 %v1874_v41, %v3472_v35  ;;  %v1600_v41 = vpop.permute.xlu2 %1599 }
 0x3b6   : > { %v2942_v27 = vpack.i.bf16 %v1884_v20, %v1883_v24  ;;  %v2962_v20 = vpack.i.bf16 %v1939_v26, %v1936_v30 }
 0x3b8   : > { %2948 = vrot.lane.b32.xlu2 %v2947_v9, %s4910_s12  ;;  %2943 = vrot.lane.b32.xlu1 %v2942_v27, %s3172_s19  ;;  %v4108_v9 = vpop.permute.xlu1 %1819 }
 0x3ba   : > { %v1335_v44 = vpop.permute.xlu0 %1334 }
 0x3bb   : > { %v1338_v50 = vsel %vm1197_vm5, %v1333_v4, %v1335_v44  ;;  %v1821_v4 = vsel %vm704_vm12, %v3981_v18, %v4029_v1  ;;  %v1348_v27 = vmul.f32 0.0, %v1335_v44  ;;  %v4912_v44 = vunpack.i.h.bf16 %v3737_v21 }
 0x3bc   : > { %v1347_v7 = vmul.f32 %v1338_v50, %v3561_v31  ;;  %v1830_v53 = vmul.f32 %v1821_v4, %v3472_v35  ;;  %v4110_v30 = vpop.permute.xlu2 %1543  ;;  %v1766_v50 = vsel %vm760_vm11, %v3985_v47, %v4040_v40  ;;  %v1294_v4 = vmul.f32 0.0, %v2901_v32 }
 0x3be   : > { %v2937_v24 = vpack.i.bf16 %v1347_v7, %v1344_v63  ;;  %v1720_v7 = vmul.f32 %v4912_v44, %v3474_v36 }
 0x3c0   : > { %2963 = vrot.lane.b32.xlu2 %v2962_v20, %s3173_s23  ;;  %2938 = vrot.lane.b32.xlu0 %v2937_v24, %s4911_s24  ;;  %v1775_v20 = vmul.f32 %v1766_v50, %v3472_v35 }
 0x3c2   : > { %v1818_v2 = vpop.permute.xlu0 %1817 }
 0x3c3   : > { %v1822_v3 = vsel %vm704_vm12, %v4029_v1, %v1818_v2  ;;  %v1722_v1 = vmul.f32 %v3997_v58, %v3480_v43  ;;  %v1660_v58 = vsel %vm731_vm9, %v1654_v51, %v4082_v56 }
 0x3c4   : > { %v1831_v34 = vmul.f32 %v1822_v3, %v3480_v43  ;;  %v4133_v21 = vpop.permute.xlu2 %1764  ;;  %v1669_v32 = vmul.f32 %v1660_v58, %v3480_v43 }
 0x3c5   : > { %v2967_v3 = vpack.i.bf16 %v1720_v7, %v1722_v1 }
 0x3c6   : > { %v2952_v33 = vpack.i.bf16 %v1831_v34, %v1830_v53  ;;  %v4126_v34 = vpop.permute.xlu1 %1547 }
 0x3c8   : > { %1362 = vrot.lane.b32.xlu2 %v1348_v27, %s4911_s24  ;;  %2953 = vrot.lane.b32.xlu0 %v2952_v33, %s3174_s26 }
 0x3ca   : > { %v1763_v63 = vpop.permute.xlu0 %1762 }
 0x3cb   : > { %v1767_v26 = vsel %vm760_vm11, %v4040_v40, %v1763_v63 }
 0x3cc   : > { %v1776_v24 = vmul.f32 %v1767_v26, %v3480_v43  ;;  %v4141_v7 = vpop.permute.xlu2 %1494 }
 0x3ce   : > { %v2957_v53 = vpack.i.bf16 %v1776_v24, %v1775_v20  ;;  %v1493_v1 = vpop.permute.xlu1 %1492  ;;  %v1882_v20 = vmul.f32 %v1867_v46, %v3474_v36  ;;  %v1829_v46 = vmul.f32 %v3981_v18, %v3474_v36 }
 0x3d0   : > { %1308 = vrot.lane.b32.xlu2 %v1294_v4, %s4910_s12  ;;  %2968 = vrot.lane.b32.xlu0 %v2967_v3, %s3176_s25  ;;  %v1605_v3 = vsel %vm675_vm8, %v4096_v22, %v1600_v41 }
 0x3d1   : > { %2958 = vrot.lane.b32.xlu1 %v2957_v53, %s3175_s28 }
 0x3d2   : > { %v1652_v40 = vpop.permute.xlu0 %1651 }
 0x3d3   : > { %v1659_v27 = vsel %vm731_vm9, %v1652_v40, %v1654_v51  ;;  %v1823_v51 = vsel %vm704_vm12, %v1818_v2, %v4108_v9 }
 0x3d4   : > { %v1668_v33 = vmul.f32 %v1659_v27, %v3472_v35  ;;  %v1832_v53 = vmul.f32 %v1823_v51, %v3561_v31  ;;  %v1614_v27 = vmul.f32 %v1605_v3, %v3472_v35  ;;  %v1774_v51 = vmul.f32 %v3985_v47, %v3474_v36 }
 0x3d6   : > { %v2977_v50 = vpack.i.bf16 %v1669_v32, %v1668_v33  ;;  %v4158_v32 = vpop.permute.xlu1 %1435  ;;  %v1438_v33 = vpop.permute.xlu2 %1437 }
 0x3d8   : > { %2978 = vrot.lane.b32.xlu0 %v2977_v50, %s3177_s14 }
 0x3da   : > { %v1873_v26 = vpop.permute.xlu0 %1872 }
 0x3db   : > { %v1876_v44 = vsel %vm648_vm13, %v4022_v52, %v1873_v26 }
 0x3dc   : > { %v1885_v24 = vmul.f32 %v1876_v44, %v3561_v31  ;;  %v2982_v44 = vpack.i.bf16 %v1832_v53, %v1829_v46  ;;  %v1940_v53 = vmul.f32 0.0, %v4063_v13  ;;  %v1667_v13 = vmul.f32 %v1652_v40, %v3474_v36 }
 0x3de   : > { %v2972_v4 = vpack.i.bf16 %v1885_v24, %v1882_v20  ;;  %v1768_v20 = vsel %vm760_vm11, %v1763_v63, %v4133_v21 }
 0x3e0   : > { %2973 = vrot.lane.b32.xlu1 %v2972_v4, %s3172_s19 }
 0x3e2   : > { %v4151_v58 = vpop.permute.xlu0 %1601 }
 0x3e3   : > { %v1606_v52 = vsel %vm675_vm8, %v1600_v41, %v4151_v58  ;;  %v1777_v41 = vmul.f32 %v1768_v20, %v3561_v31 }
 0x3e4   : > { %v1615_v2 = vmul.f32 %v1606_v52, %v3480_v43  ;;  %v4175_v52 = vpop.permute.xlu1 %1657 }
 0x3e5   : > { %v2992_v46 = vpack.i.bf16 %v1777_v41, %v1774_v51  ;;  %v1661_v47 = vsel %vm731_vm9, %v4082_v56, %v4175_v52 }
 0x3e6   : > { %v2987_v50 = vpack.i.bf16 %v1615_v2, %v1614_v27  ;;  %v4177_v2 = vpop.permute.xlu2 %2913 }
 0x3e8   : > { %2983 = vrot.lane.b32.xlu1 %v2982_v44, %s3174_s26  ;;  %2988 = vrot.lane.b32.xlu0 %v2987_v50, %s3178_s27  ;;  %v1499_v50 = vsel %vm564_vm7, %v1493_v1, %v4141_v7 }
 0x3e9   : > { %v1508_v41 = vmul.f32 %v1499_v50, %v3480_v43  ;;  %v1443_v50 = vsel %vm1086_vm1, %v4158_v32, %v1438_v33 }
 0x3ea   : > { %v1546_v24 = vpop.permute.xlu0 %1545 }
 0x3eb   : > { %v1551_v18 = vsel %vm619_vm6, %v4110_v30, %v1546_v24  ;;  %v1552_v4 = vsel %vm619_vm6, %v1546_v24, %v4126_v34  ;;  %v1670_v24 = vmul.f32 %v1661_v47, %v3561_v31  ;;  %v2916_v47 = vunpack.i.h.bf16 %v4177_v2 }
 0x3ec   : > { %v1560_v3 = vmul.f32 %v1551_v18, %v3472_v35  ;;  %v1561_v63 = vmul.f32 %v1552_v4, %v3480_v43  ;;  %v1236_v4 = vmul.f32 %v2886_v49, %v3561_v31 }
 0x3ed   : > { %v3007_v51 = vpack.i.bf16 %v1670_v24, %v1667_v13 }
 0x3ee   : > { %v2997_v27 = vpack.i.bf16 %v1561_v63, %v1560_v3  ;;  %v4198_v56 = vpop.permute.xlu2 %1496  ;;  %v4913_v63 = vunpack.i.h.bf16 %v3989_v54  ;;  %v2915_v54 = vunpack.i.l.bf16 %v4177_v2  ;;  %v1833_v2 = vmul.f32 0.0, %v4108_v9 }
 0x3f0   : > { %2993 = vrot.lane.b32.xlu1 %v2992_v46, %s3175_s28  ;;  %1954 = vrot.lane.b32.xlu0 %v1940_v53, %s3173_s23  ;;  %v1886_v46 = vmul.f32 0.0, %v1873_v26 }
 0x3f1   : > { %2998 = vrot.lane.b32.xlu2 %v2997_v27, %s3179_s15 }
 0x3f2   : > { %v1491_v44 = vpop.permute.xlu0 %1490 }
 0x3f3   : > { %v1498_v20 = vsel %vm564_vm7, %v1491_v44, %v1493_v1 }
 0x3f4   : > { %v1507_v18 = vmul.f32 %v1498_v20, %v3472_v35 }
 0x3f6   : > { %v3002_v3 = vpack.i.bf16 %v1508_v41, %v1507_v18  ;;  %v1452_v18 = vmul.f32 %v1443_v50, %v3472_v35 }
 0x3f8   : > { %1250 = vrot.lane.b32.xlu1 %v1236_v4, %s3188_s17  ;;  %3008 = vrot.lane.b32.xlu0 %v3007_v51, %s3177_s14  ;;  %v2866_v51 = vunpack.i.h.bf16 %v3801_v61  ;;  %s4914_s17 = smov 119  }
 0x3f9   : > { %3003 = vrot.lane.b32.xlu2 %v3002_v3, %s3180_s16 }
 0x3fa   : > { %v4200_v40 = vpop.permute.xlu0 %2908 }
 0x3fb   : > { %v2910_v1 = vunpack.i.l.bf16 %v4200_v40 }
 0x3fd   : > { %v1714_v53 = vsel %vm786_vm10, %v4913_v63, %v2910_v1  ;;  %v1724_v6 = vmul.f32 0.0, %v2910_v1  ;;  %v1389_v63 = vsel %vm1141_vm3, %v2866_v51, %v2915_v54 }
 0x3fe   : > { %v1723_v49 = vmul.f32 %v1714_v53, %v3561_v31  ;;  %v1550_v53 = vpop.permute.xlu1 %1549  ;;  %v1398_v61 = vmul.f32 %v1389_v63, %v3472_v35  ;;  %v1506_v63 = vmul.f32 %v1491_v44, %v3474_v36 }
 0x400   : > { %v3012_v27 = vpack.i.bf16 %v1724_v6, %v1723_v49 }
 0x401   : > { %1900 = vrot.lane.b32.xlu2 %v1886_v46, %s3172_s19  ;;  %s4915_s19 = smov 120  }
 0x402   : > { %v4211_v13 = vpop.permute.xlu2 %2918  ;;  %v1440_v20 = vpop.permute.xlu0 %1439  ;;  %3013 = vrot.lane.b32.xlu1 %v3012_v27, %s3176_s25 }
 0x403   : > { %v2921_v41 = vunpack.i.h.bf16 %v4211_v13  ;;  %v2920_v24 = vunpack.i.l.bf16 %v4211_v13  ;;  %v1444_v26 = vsel %vm1086_vm1, %v1438_v33, %v1440_v20  ;;  %v1390_v33 = vsel %vm1141_vm3, %v2915_v54, %v2916_v47 }
 0x404   : > { %v1453_v4 = vmul.f32 %v1444_v26, %v3480_v43  ;;  %v1399_v6 = vmul.f32 %v1390_v33, %v3480_v43  ;;  %v1613_v54 = vmul.f32 %v4096_v22, %v3474_v36  ;;  %v1500_v22 = vsel %vm564_vm7, %v4141_v7, %v4198_v56 }
 0x405   : > { %v1365_v3 = vsel %vm1168_vm4, %v2920_v24, %v2921_v41  ;;  %v2855_v13 = vunpack.i.l.bf16 %v3803_v8 }
 0x406   : > { %v3017_v1 = vpack.i.bf16 %v1453_v4, %v1452_v18  ;;  %2122 = vmatpush.msrb.mxu2 %v1365_v3  ;;  %v3027_v3 = vpack.i.bf16 %v1399_v6, %v1398_v61  ;;  %v1388_v61 = vpop.permute.xlu1 %1387 }
 0x407   : > { %v1391_v7 = vsel %vm1141_vm3, %v2916_v47, %v1388_v61 }
 0x408   : > { %3018 = vrot.lane.b32.xlu0 %v3017_v1, %s4914_s17  ;;  %v1778_v1 = vmul.f32 0.0, %v4133_v21  ;;  %v1559_v21 = vmul.f32 %v4110_v30, %v3474_v36  ;;  %v1400_v30 = vmul.f32 %v1391_v7, %v3561_v31 }
 0x409   : > { %1847 = vrot.lane.b32.xlu2 %v1833_v2, %s3174_s26  ;;  %v1553_v2 = vsel %vm619_vm6, %v4126_v34, %v1550_v53  ;;  %v1509_v34 = vmul.f32 %v1500_v22, %v3561_v31 }
 0x40a   : > { %v4233_v49 = vpop.permute.xlu2 %2933  ;;  %v1604_v46 = vpop.permute.xlu0 %1603 }
 0x40b   : > { %v2936_v27 = vunpack.i.h.bf16 %v4233_v49  ;;  %v2935_v9 = vunpack.i.l.bf16 %v4233_v49  ;;  %v1607_v50 = vsel %vm675_vm8, %v4151_v58, %v1604_v46  ;;  %v1562_v58 = vmul.f32 %v1553_v2, %v3561_v31  ;;  %v4930_v49 = vld [vmem:[#allocation35_spill] sm:$0xff] }
 0x40c   : > { %v1616_v26 = vmul.f32 %v1607_v50, %v3561_v31  ;;  %v3037_v50 = vpack.i.bf16 %v1509_v34, %v1506_v63  ;;  %v1451_v2 = vmul.f32 %v4158_v32, %v3474_v36  ;;  %v2891_v34 = vunpack.i.h.bf16 %v4032_v60 }
 0x40d   : > { %v4245_v18 = vsel %vm1252_vm2, %v2935_v9, %v2936_v27  ;;  %v3032_v6 = vpack.i.bf16 %v1562_v58, %v1559_v21  ;;  %v1563_v21 = vmul.f32 0.0, %v1550_v53 }
 0x40e   : > { %v3022_v4 = vpack.i.bf16 %v1616_v26, %v1613_v54  ;;  %v1671_v26 = vmul.f32 0.0, %v4175_v52  ;;  %v1254_v32 = vsel %vm1252_vm2, %v2891_v34, %v2935_v9  ;;  %v1401_v9 = vmul.f32 0.0, %v1388_v61 }
 0x410   : > { %3028 = vrot.lane.b32.xlu0 %v3027_v3, %s4915_s19  ;;  %3023 = vrot.lane.b32.xlu1 %v3022_v4, %s3178_s27 }
 0x411   : > { %1792 = vrot.lane.b32.xlu2 %v1778_v1, %s3175_s28 }
 0x412   : > { %v1442_v33 = vpop.permute.xlu0 %1441  ;;  %v4261_v54 = vpop.permute.xlu2 %2948 }
 0x413   : > { %v1445_v4 = vsel %vm1086_vm1, %v1440_v20, %v1442_v33  ;;  %v2951_v3 = vunpack.i.h.bf16 %v4261_v54  ;;  %v1397_v20 = vmul.f32 %v2866_v51, %v3474_v36 }
 0x414   : > { %v1454_v1 = vmul.f32 %v1445_v4, %v3561_v31 }
 0x415   : > { %v3047_v63 = vpack.i.bf16 %v1400_v30, %v1397_v20  ;;  %v1510_v30 = vmul.f32 0.0, %v4198_v56 }
 0x418   : > { %3038 = vrot.lane.b32.xlu0 %v3037_v50, %s3180_s16  ;;  %3033 = vrot.lane.b32.xlu1 %v3032_v6, %s3179_s15  ;;  %v3042_v6 = vpack.i.bf16 %v1454_v1, %v1451_v2 }
 0x419   : > { %1685 = vrot.lane.b32.xlu2 %v1671_v26, %s3177_s14 }
 0x41a   : > { %v4270_v44 = vpop.permute.xlu0 %2923  ;;  %v4286_v50 = vpop.permute.xlu2 %2963 }
 0x41b   : > { %v2926_v52 = vunpack.i.h.bf16 %v4270_v44  ;;  %v2925_v47 = vunpack.i.l.bf16 %v4270_v44  ;;  %v2965_v53 = vunpack.i.l.bf16 %v4286_v50  ;;  %v1617_v44 = vmul.f32 0.0, %v1604_v46 }
 0x41d   : > { %v1311_v22 = vsel %vm1223_vm15, %v2925_v47, %v2926_v52  ;;  %v4283_v58 = vsel %vm1223_vm15, %v2926_v52, %v2951_v3  ;;  %v2950_v52 = vunpack.i.l.bf16 %v4261_v54 }
 0x41e   : > { %2123 = vmatpush.msrb.mxu2 %v1311_v22  ;;  %v2835_v22 = vunpack.i.l.bf16 %v3779_v62 }
 0x420   : > { %3048 = vrot.lane.b32.xlu0 %v3047_v63, %s4915_s19  ;;  %2124 = vmatpush.msrb.mxu2 %v3472_v35 }
 0x421   : > { %1577 = vrot.lane.b32.xlu2 %v1563_v21, %s3179_s15  ;;  %3043 = vrot.lane.b32.xlu1 %v3042_v6, %s4914_s17  ;;  %v4917_v21 = vunpack.i.h.bf16 %v3803_v8  ;;  %v4918_v6 = vunpack.i.h.bf16 %v3779_v62  ;;  %v4919_v8 = vunpack.i.h.bf16 %v3715_v38  ;;  %s4959_s15 = sshll.u32 %s3337_s22, 7 }
 0x422   : > { %v4295_v51 = vpop.permute.xlu1 %2928  ;;  %2125 = vmatpush.msrb.mxu2 %v1254_v32  ;;  %v4352_v20 = vpop.permute.xlu2 %1362 }
 0x423   : > { %v2931_v26 = vunpack.i.h.bf16 %v4295_v51  ;;  %v2930_v7 = vunpack.i.l.bf16 %v4295_v51  ;;  %v1087_v32 = vsel %vm1086_vm1, %v2835_v22, %v4918_v6 }
 0x424   : > { %2126 = vmatpush.msrb.mxu2 %v3944_v37 }
 0x425   : > { %v1956_v35 = vsel %vm564_vm7, %v2965_v53, %v2930_v7  ;;  %v1957_v4 = vsel %vm564_vm7, %v2930_v7, %v2931_v26  ;;  %v2800_v7 = vunpack.i.l.bf16 %v3692_v14 }
 0x426   : > { %2107 = vmatpush.msrb.mxu1 %v1956_v35  ;;  %2127 = vmatpush.msrb.mxu2 %v3810_v59  ;;  %v2242_v59 = vld [vmem:[%s4832_s7] sm:$0xff] }
 0x427   : > { %2147 = vmatpush.msra.mxu3 %v1957_v4 }
 0x428   : > { %1524 = vrot.lane.b32.xlu0 %v1510_v30, %s3180_s16  ;;  %2128 = vmatpush.msrb.mxu2 %v3786_v17  ;;  %s4722_s16 = scalar_lea.vmem [#allocation6], %s4959_s15 }
 0x429   : > { %1415 = vrot.lane.b32.xlu2 %v1401_v9, %s4915_s19  ;;  %1631 = vrot.lane.b32.xlu1 %v1617_v44, %s3178_s27  ;;  %s2539_s19 = sshll.u32 %s4722_s16, 4  ;;  %s3120_s27 = scalar_lea.hbm %s4836_s11, 256  ;;  %s2540_s19 = int_to_ptr.vmem [resolvable:$true] %s2539_s19 }
 0x42a   : > { %v4311_v37 = vpop.permute.xlu1 %2943  ;;  %2129 = vmatpush.msrb.mxu2 %v3721_v55  ;;  %v1455_v55 = vmul.f32 0.0, %v1442_v33  ;;  %v1310_v33 = vsel %vm1223_vm15, %v2950_v52, %v2925_v47  ;;  %v1309_v35 = vpop.permute.xlu2 %1308 }
 0x42b   : > { %v2946_v56 = vunpack.i.h.bf16 %v4311_v37  ;;  %v2945_v1 = vunpack.i.l.bf16 %v4311_v37 }
 0x42c   : > { %2130 = vmatpush.msrb.mxu2 %v3710_v25 }
 0x42d   : > { %v1903_v17 = vsel %vm619_vm6, %v2945_v1, %v2946_v56 }
 0x42e   : > { %2131 = vmatpush.msrb.mxu2 %v3701_v0  ;;  %2148 = vmatpush.msra.mxu3 %v1903_v17  ;;  %v2790_v17 = vunpack.i.l.bf16 %v3678_v11 }
 0x430   : > { %2245 = vperm.xlu0 %2726, %v2242_v59   ;;  %2132 = vmatpush.msrb.mxu2 %v3690_v39  ;;  %v2399_v39 = vld [vmem:[%s4834_s9 + $0x8] sm:$0xff]  ;;  %v4920_v59 = vunpack.i.h.bf16 %v3667_v48 }
 0x431   : > { %1469 = vrot.lane.b32.xlu1 %v1455_v55, %s4914_s17  ;;  %s2538_s17 = scalar_lea.hbm %s4836_s11, %s2656_s30 }
 0x432   : > { %v4328_v25 = vpop.permute.xlu0 %2938  ;;  %2133 = vmatpush.msrb.mxu2 %v3673_v16  ;;  %s2541_s23 = sshll.u32 %s2538_s17, 4  ;;  %s2542_s23 = int_to_ptr.hbm [resolvable:$true] %s2541_s23 }
 0x433   : > { %v2941_v46 = vunpack.i.h.bf16 %v4328_v25  ;;  %v2940_v61 = vunpack.i.l.bf16 %v4328_v25  ;;  %s3114_s26 = sshra.s32 %s2542_s23, 4  ;;  %s3115_s26 = int_to_ptr.hbm [resolvable:$true] %s3114_s26 }
 0x434   : > { %2134 = vmatpush.msrb.mxu2 %v3659_v45  ;;  %v2890_v45 = vunpack.i.l.bf16 %v4032_v60  ;;  %v2820_v60 = vunpack.i.l.bf16 %v3715_v38  ;;  %v2911_v38 = vunpack.i.h.bf16 %v4200_v40  ;;  %s3116_s28 = scalar_lea.hbm %s3115_s26, 128  ;;  %p3121_p0 = scmp.lt.s32.totalorder %s3115_s26, %s4836_s11 }
 0x435   : > { %v1364_v0 = vsel %vm1168_vm4, %v2940_v61, %v2920_v24  ;;  %v4346_v16 = vsel %vm1168_vm4, %v2921_v41, %v2941_v46  ;;  %v2870_v24 = vunpack.i.l.bf16 %v3936_v57  ;;  %v2441_v61 = vld [vmem:[%s4835_s10 + $0x18] sm:$0xff]  ;;  %p3117_p6 = scmp.ne.s32.totalorder %s3115_s26, %s3116_s28  ;;  %p3122_p1 = scmp.lt.s32.totalorder %s3120_s27, %s3116_s28 }
 0x436   : > { %2082 = vmatpush.msra.mxu0 %v1364_v0  ;;  %2135 = vmatpush.msrb.mxu2 %v3648_v29  ;;  %v1253_v47 = vsel %vm1252_vm2, %v2890_v45, %v2891_v34  ;;  %v2810_v34 = vunpack.i.l.bf16 %v3667_v48  ;;  %v1031_v30 = vsel %vm564_vm7, %v2820_v60, %v4919_v8  ;;  %v2780_v0 = vunpack.i.l.bf16 %v3638_v23 }
 0x437   : > { %v4921_v48 = vunpack.i.h.bf16 %v3692_v14  ;;  %v2760_v14 = vunpack.i.l.bf16 %v3624_v10  ;;  %v4924_v60 = vunpack.i.h.bf16 %v3653_v15  ;;  %p3118_p9 = pnand %p3117_p6, %p3301_p11  ;;  %p3123_p3 = por %p3122_p1, %p3121_p0 }
 0x438   : > { %2409 = vperm.xlu0 %2726, %v2399_v39   ;;  %2083 = vmatpush.msra.mxu0 %v1310_v33  ;;  %v977_v55 = vsel %vm619_vm6, %v2810_v34, %v4920_v59  ;;  %v2770_v33 = vunpack.i.l.bf16 %v3653_v15  ;;  %v2740_v34 = vunpack.i.l.bf16 %v3621_v5 }
 0x439   : > { %2136 = vmatpush.msrb.mxu2 %v3643_v28  ;;  %v4916_v28 = vunpack.i.h.bf16 %v3936_v57  ;;  %v1142_v57 = vsel %vm1141_vm3, %v2855_v13, %v4917_v21  ;;  %v924_v39 = vsel %vm675_vm8, %v2800_v7, %v4921_v48  ;;  %p3119_p13 = pneg %p3118_p9 }
 0x43a   : > { %v4355_v2 = vpop.permute.xlu0 %2953  ;;  %2084 = vmatpush.msra.mxu0 %v3474_v36  ;;  %v761_v21 = vsel %vm760_vm11, %v2770_v33, %v4924_v60 }
 0x43b   : > { %v2956_v29 = vunpack.i.h.bf16 %v4355_v2  ;;  %v2955_v41 = vunpack.i.l.bf16 %v4355_v2  ;;  %2137 = vmatpush.msrb.mxu2 %v3629_v12  ;;  %v1198_v63 = vsel %vm1197_vm5, %v2870_v24, %v4916_v28  ;;  %v2438_v12 = vld [vmem:[%s4835_s10] sm:$0xff]  ;;  %v4922_v24 = vunpack.i.h.bf16 %v3678_v11  ;;  %p3124_p4 = pnand %p3123_p3, %p3119_p13 }
 0x43c   : > { %2085 = vmatpush.msra.mxu0 %v1253_v47  ;;  %v2750_v11 = vunpack.i.l.bf16 %v3634_v19 }
 0x43d   : > { %v1850_v36 = vsel %vm675_vm8, %v2955_v41, %v2956_v29  ;;  %v869_v13 = vsel %vm731_vm9, %v2790_v17, %v4922_v24  ;;  %v4927_v17 = vunpack.i.h.bf16 %v3621_v5 }
 0x43e   : > { %2086 = vmatpush.msra.mxu0 %v1198_v63  ;;  %2149 = vmatpush.msra.mxu3 %v1850_v36  ;;  %v4923_v36 = vunpack.i.h.bf16 %v3638_v23  ;;  %v4925_v23 = vunpack.i.h.bf16 %v3624_v10  ;;  %v1367_v10 = vsel %vm1168_vm4, %v2941_v46, %v4352_v20 }
 0x43f   : > { %v594_v59 = vsel %vm593_vm14, %v2740_v34, %v4927_v17 }
 0x440   : > { %2444 = vperm.xlu0 %2726, %v2438_v12   ;;  %2087 = vmatpush.msra.mxu0 %v1142_v57  ;;  %v815_v12 = vsel %vm786_vm10, %v2780_v0, %v4923_v36  ;;  %v705_v6 = vsel %vm704_vm12, %v2760_v14, %v4925_v23 }
 0x442   : > { %v4385_v53 = vpop.permute.xlu0 %2968  ;;  %2088 = vmatpush.msra.mxu0 %v1087_v32  ;;  %v4926_v32 = vunpack.i.h.bf16 %v3634_v19 }
 0x443   : > { %v4388_v4 = vpop.permute.xlu1 %2958  ;;  %v2970_v62 = vunpack.i.l.bf16 %v4385_v53  ;;  %v2971_v24 = vunpack.i.h.bf16 %v4385_v53 }
 0x444   : > { %v2961_v9 = vunpack.i.h.bf16 %v4388_v4  ;;  %v2960_v44 = vunpack.i.l.bf16 %v4388_v4  ;;  %2089 = vmatpush.msra.mxu0 %v1031_v30  ;;  %v649_v15 = vsel %vm648_vm13, %v2750_v11, %v4926_v32 }
 0x445   : > { %v1741_v45 = vsel %vm786_vm10, %v2911_v38, %v2970_v62  ;;  %v1740_v34 = vsel %vm786_vm10, %v2971_v24, %v2911_v38 }
 0x446   : > { %2090 = vmatpush.msra.mxu0 %v977_v55  ;;  %v1795_v52 = vsel %vm731_vm9, %v2960_v44, %v2961_v9  ;;  %v1313_v55 = vsel %vm1223_vm15, %v2951_v3, %v1309_v35 }
 0x447   : > { %2150 = vmatpush.msra.mxu3 %v1795_v52 }
 0x448   : > { %2459 = vperm.xlu0 %2726, %v2441_v61   ;;  %2091 = vmatpush.msra.mxu0 %v924_v39  ;;  %v2966_v39 = vunpack.i.h.bf16 %v4286_v50 }
 0x449   : > { %2151 = vmatpush.msra.mxu3 %v1741_v45 }
 0x44a   : > { %v4422_v47 = vpop.permute.xlu0 %2978  ;;  %2092 = vmatpush.msra.mxu0 %v869_v13 }
 0x44b   : > { %v4425_v22 = vpop.permute.xlu2 %2998  ;;  %v2981_v28 = vunpack.i.h.bf16 %v4422_v47  ;;  %v2980_v63 = vunpack.i.l.bf16 %v4422_v47 }
 0x44c   : > { %2093 = vmatpush.msra.mxu0 %v815_v12  ;;  %v3001_v5 = vunpack.i.h.bf16 %v4425_v22  ;;  %v3000_v46 = vunpack.i.l.bf16 %v4425_v22  ;;  %v2400_v22 = vld [vmem:[%s4834_s9 + $0x10] sm:$0xff] }
 0x44d   : > { %v1688_v57 = vsel %vm760_vm11, %v2980_v63, %v2981_v28 }
 0x44e   : > { %2094 = vmatpush.msra.mxu0 %v761_v21  ;;  %2152 = vmatpush.msra.mxu3 %v1688_v57  ;;  %v1580_v48 = vsel %vm648_vm13, %v3000_v46, %v3001_v5  ;;  %v4515_v57 = vld [vmem:[%s4828_s3] sm:$0xff] }
 0x44f   : > { %2138 = vmatmul.f32.vlgmr.msrb.gmra.mxu2 %v4515_v57 }
 0x450   : > { %2095 = vmatpush.msra.mxu0 %v705_v6 }
 0x452   : > { %v4448_v7 = vpop.permute.xlu1 %2973  ;;  %2096 = vmatpush.msra.mxu0 %v649_v15 }
 0x453   : > { %v2975_v8 = vunpack.i.l.bf16 %v4448_v7  ;;  %v4451_v30 = vpop.permute.xlu2 %3003  ;;  %v2976_v13 = vunpack.i.h.bf16 %v4448_v7 }
 0x454   : > { %2097 = vmatpush.msra.mxu0 %v594_v59  ;;  %v3006_v3 = vunpack.i.h.bf16 %v4451_v30  ;;  %v3005_v35 = vunpack.i.l.bf16 %v4451_v30  ;;  %v4928_v59 = vld [vmem:[#allocation37_spill] sm:$0xff] }
 0x455   : > { %v1902_v19 = vsel %vm619_vm6, %v2975_v8, %v2945_v1  ;;  %2098 = vmatmul.f32.vlgmr.msra.gmra.mxu0 %v4515_v57 }
 0x456   : > { %2202 = vmatpush.msrb.mxu0 %v1367_v10  ;;  %2108 = vmatpush.msrb.mxu1 %v1902_v19  ;;  %v4929_v10 = vunpack.i.h.bf16 %v4928_v59 }
 0x458   : > { %2203 = vmatpush.msrb.mxu0 %v1313_v55  ;;  %v1201_v19 = vsel %vm1197_vm5, %v4929_v10, %v4026_v42  ;;  %v4932_v55 = vld [vmem:[#allocation32_spill] sm:$0xff] }
 0x45a   : > { %2204 = vmatpush.msrb.mxu0 %v3561_v31  ;;  %v4468_v61 = vpop.permute.xlu1 %2983  ;;  %v4470_v25 = vpop.permute.xlu0 %2988 }
 0x45b   : > { %v2985_v20 = vunpack.i.l.bf16 %v4468_v61  ;;  %v1901_v52 = vpop.permute.xlu2 %1900  ;;  %v2991_v1 = vunpack.i.h.bf16 %v4470_v25  ;;  %v2990_v54 = vunpack.i.l.bf16 %v4470_v25  ;;  %v2986_v11 = vunpack.i.h.bf16 %v4468_v61 }
 0x45c   : > { %v1905_v21 = vsel %vm619_vm6, %v2976_v13, %v1901_v52 }
 0x45d   : > { %v1849_v31 = vsel %vm675_vm8, %v2985_v20, %v2955_v41  ;;  %v1634_v0 = vsel %vm704_vm12, %v2990_v54, %v2991_v1  ;;  %v1527_v41 = vsel %vm593_vm14, %v3005_v35, %v3006_v3  ;;  %v4933_v20 = vunpack.i.h.bf16 %v4932_v55 }
 0x45e   : > { %2109 = vmatpush.msrb.mxu1 %v1849_v31  ;;  %2153 = vmatpush.msra.mxu3 %v1634_v0  ;;  %v4934_v0 = vld [vmem:[#allocation25_spill] sm:$0xff]  ;;  %v1851_v50 = vsel %vm675_vm8, %v2956_v29, %v2986_v11 }
 0x460   : > { %2154 = vmatpush.msra.mxu3 %v1580_v48 }
 0x462   : > { %v4497_v45 = vpop.permute.xlu1 %2993  ;;  %v1955_v33 = vpop.permute.xlu0 %1954  ;;  %2155 = vmatpush.msra.mxu3 %v1527_v41 }
 0x463   : > { %v2995_v14 = vunpack.i.l.bf16 %v4497_v45  ;;  %v1848_v36 = vpop.permute.xlu2 %1847  ;;  %v1959_v12 = vsel %vm564_vm7, %v2966_v39, %v1955_v33  ;;  %v4935_v33 = vld [vmem:[#allocation31_spill] sm:$0xff] }
 0x464   : > { %2227 = vmatpush.msra.mxu2 %v1959_v12  ;;  %v1852_v23 = vsel %vm675_vm8, %v2986_v11, %v1848_v36 }
 0x465   : > { %v1794_v60 = vsel %vm731_vm9, %v2995_v14, %v2960_v44  ;;  %v2996_v44 = vunpack.i.h.bf16 %v4497_v45  ;;  %v4936_v14 = vld [vmem:[#allocation29_spill] sm:$0xff] }
 0x466   : > { %2110 = vmatpush.msrb.mxu1 %v1794_v60  ;;  %2228 = vmatpush.msra.mxu2 %v1905_v21  ;;  %v4937_v60 = vld [vmem:[#allocation23_spill] sm:$0xff] }
 0x467   : > { %v1796_v51 = vsel %vm731_vm9, %v2961_v9, %v2996_v44 }
 0x468   : > { %2111 = vmatpush.msrb.mxu1 %v1740_v34  ;;  %2229 = vmatpush.msra.mxu2 %v1852_v23  ;;  %v4938_v23 = vld [vmem:[#allocation30_spill] sm:$0xff] }
 0x46a   : > { %v1251_v6 = vpop.permute.xlu1 %1250  ;;  %v4526_v32 = vpop.permute.xlu0 %3008 }
 0x46b   : > { %v1793_v15 = vpop.permute.xlu2 %1792  ;;  %v3010_v40 = vunpack.i.l.bf16 %v4526_v32  ;;  %v1256_v38 = vsel %vm1252_vm2, %v2936_v27, %v1251_v6  ;;  %v4931_v27 = vld [vmem:[#allocation34_spill] sm:$0xff]  ;;  %v3011_v42 = vunpack.i.h.bf16 %v4526_v32  ;;  %vm4943_vm2 = vcmask 982016  }
 0x46c   : > { %2205 = vmatpush.msrb.mxu0 %v1256_v38  ;;  %v1797_v8 = vsel %vm731_vm9, %v2996_v44, %v1793_v15  ;;  %v1090_v52 = vsel %vm1086_vm1, %v4933_v20, %v4931_v27  ;;  %v2252_v32 = vld [vmem:[%s4833_s8] sm:$0xff]  ;;  %v4579_v27 = vld [vmem:[%s4828_s3 + $0x8] sm:$0xff]  ;;  %vm2078_vm1 = vcmask 719872   ;;  %vm4948_vm8 = vmmov %vm4943_vm2 }
 0x46d   : > { %2230 = vmatpush.msra.mxu2 %v1797_v8  ;;  %v1687_v17 = vsel %vm760_vm11, %v3010_v40, %v2980_v63  ;;  %v4939_v15 = vld [vmem:[#allocation22_spill] sm:$0xff]  ;;  %2255 = vperm.xlu1 %3052, %v2252_v32   ;;  %v4940_v40 = vld [vmem:[#allocation27_spill] sm:$0xff]  ;;  %v1689_v4 = vsel %vm760_vm11, %v2981_v28, %v3011_v42 }
 0x46e   : > { %2112 = vmatpush.msrb.mxu1 %v1687_v17  ;;  %2206 = vmatpush.msrb.mxu0 %v1201_v19  ;;  %v4941_v17 = vld [vmem:[#allocation28_spill] sm:$0xff]  ;;  %v4957_v32 = vld [vmem:[#allocation14_spill] sm:$0xff] }
 0x470   : > { %2207 = vmatpush.msrb.mxu0 %v4930_v49  ;;  %v4942_v49 = vld [vmem:[#allocation20_spill] sm:$0xff] }
 0x472   : > { %2208 = vmatpush.msrb.mxu0 %v1090_v52  ;;  %v1958_v52 = vsel %vm564_vm7, %v2931_v26, %v2966_v39  ;;  %vm4945_vm7 = vmmov %vm4943_vm2 }
 0x473   : > { %v1686_v41 = vpop.permute.xlu2 %1685 }
 0x474   : > { %v3014_v31 = vpop.permute.xlu1 %3013  ;;  %2209 = vmatpush.msrb.mxu0 %v4934_v0  ;;  %v1690_v36 = vsel %vm760_vm11, %v3011_v42, %v1686_v41 }
 0x475   : > { %v3016_v48 = vunpack.i.h.bf16 %v3014_v31  ;;  %v3015_v63 = vunpack.i.l.bf16 %v3014_v31  ;;  %2414 = vperm.xlu1 %3052, %v2400_v22  }
 0x476   : > { %2210 = vmatpush.msrb.mxu0 %v4935_v33  ;;  %v4946_v33 = vld [vmem:[#allocation38_spill] sm:$0xff] }
 0x477   : > { %v1743_v24 = vsel %vm786_vm10, %v3015_v63, %v3016_v48 }
 0x478   : > { %2211 = vmatpush.msrb.mxu0 %v4936_v14  ;;  %2231 = vmatpush.msra.mxu2 %v1743_v24  ;;  %v4947_v14 = vld [vmem:[#allocation36_spill] sm:$0xff] }
 0x47a   : > { %v4553_v12 = vpop.permute.xlu0 %3018  ;;  %2212 = vmatpush.msrb.mxu0 %v4937_v60  ;;  %2232 = vmatpush.msra.mxu2 %v1690_v36  ;;  %v4949_v36 = vld [vmem:[#allocation33_spill] sm:$0xff]  ;;  %v4952_v60 = vld [vmem:[#allocation18_spill] sm:$0xff] }
 0x47b   : > { %v3021_v21 = vunpack.i.h.bf16 %v4553_v12  ;;  %v3020_v34 = vunpack.i.l.bf16 %v4553_v12  ;;  %v4951_v12 = vld [vmem:[#allocation24_spill] sm:$0xff] }
 0x47c   : > { %2213 = vmatpush.msrb.mxu0 %v4938_v23  ;;  %v4955_v23 = vld [vmem:[#allocation17_spill] sm:$0xff] }
 0x47d   : > { %v1472_v6 = vsel %vm1057_vm0, %v3020_v34, %v3021_v21 }
 0x47e   : > { %2156 = vmatpush.msra.mxu3 %v1472_v6  ;;  %2214 = vmatpush.msrb.mxu0 %v4939_v15  ;;  %v4956_v6 = vld [vmem:[#allocation16_spill] sm:$0xff]  ;;  %v4958_v15 = vld [vmem:[#allocation15_spill] sm:$0xff] }
 0x480   : > { %2215 = vmatpush.msrb.mxu0 %v4940_v40 }
 0x482   : > { %v4567_v38 = vpop.permute.xlu0 %3028  ;;  %v4569_v8 = vpop.permute.xlu1 %3023  ;;  %2216 = vmatpush.msrb.mxu0 %v4941_v17 }
 0x483   : > { %v3031_v59 = vunpack.i.h.bf16 %v4567_v38  ;;  %v3030_v10 = vunpack.i.l.bf16 %v4567_v38  ;;  %v3025_v19 = vunpack.i.l.bf16 %v4569_v8  ;;  %v3026_v37 = vunpack.i.h.bf16 %v4569_v8 }
 0x484   : > { %2217 = vmatpush.msrb.mxu0 %v4942_v49 }
 0x485   : > { %v1633_v55 = vsel %vm704_vm12, %v3025_v19, %v2990_v54  ;;  %v1418_v20 = vsel %vm4943_vm2, %v3030_v10, %v3031_v59  ;;  %2218 = vmatmul.f32.vlgmr.msrb.gmra.mxu0 %v4515_v57  ;;  %v1904_v54 = vsel %vm619_vm6, %v2946_v56, %v2976_v13  ;;  %v1742_v56 = vsel %vm786_vm10, %v2970_v62, %v3015_v63  ;;  %vm4944_vm6 = vmmov %vm4943_vm2  ;;  %v2439_v63 = vld [vmem:[%s4835_s10 + $0x8] sm:$0xff] }
 0x486   : > { %2113 = vmatpush.msrb.mxu1 %v1633_v55  ;;  %2157 = vmatpush.msra.mxu3 %v1418_v20  ;;  %v1635_v53 = vsel %vm704_vm12, %v2991_v1, %v3026_v37 }
 0x487   : > { %2631 = vmatmul.msk.f32.vlgmr.msra.gmra.mxu3 %vm2078_vm1, %v4579_v27  ;;  %2449 = vperm.xlu1 %3052, %v2439_v63  }
 0x488   : > { %2187 = vmatpush.msrb.mxu3 %v1958_v52 }
 0x48a   : > { %2188 = vmatpush.msrb.mxu3 %v1904_v54  ;;  %v3039_v31 = vpop.permute.xlu0 %3038  ;;  %v3034_v0 = vpop.permute.xlu1 %3033  ;;  %v2267_v54 = vld [vmem:[%s4829_s4 + $0x8] sm:$0xff] }
 0x48b   : > { %v3040_v48 = vunpack.i.l.bf16 %v3039_v31  ;;  %v3035_v41 = vunpack.i.l.bf16 %v3034_v0  ;;  %v3036_v29 = vunpack.i.h.bf16 %v3034_v0  ;;  %v3041_v7 = vunpack.i.h.bf16 %v3039_v31 }
 0x48c   : > { %2189 = vmatpush.msrb.mxu3 %v1851_v50  ;;  %v2401_v50 = vld [vmem:[%s4834_s9 + $0x18] sm:$0xff] }
 0x48d   : > { %v1579_v26 = vsel %vm648_vm13, %v3035_v41, %v3000_v46  ;;  %v1526_v2 = vsel %vm593_vm14, %v3040_v48, %v3005_v35  ;;  %v1581_v35 = vsel %vm648_vm13, %v3001_v5, %v3036_v29  ;;  %v1528_v45 = vsel %vm593_vm14, %v3006_v3, %v3041_v7  ;;  %v1578_v5 = vpop.permute.xlu2 %1577  ;;  %v2268_v41 = vld [vmem:[%s4829_s4 + $0x10] sm:$0xff] }
 0x48e   : > { %2190 = vmatpush.msrb.mxu3 %v1796_v51  ;;  %2114 = vmatpush.msrb.mxu1 %v1579_v26  ;;  %v1582_v44 = vsel %vm648_vm13, %v3036_v29, %v1578_v5  ;;  %v2269_v26 = vld [vmem:[%s4829_s4 + $0x18] sm:$0xff]  ;;  %v3054_v5 = vld [vmem:[%s3343_s13 + $0x8] sm:$0xff] }
 0x490   : > { %2191 = vmatpush.msrb.mxu3 %v1742_v56  ;;  %2115 = vmatpush.msrb.mxu1 %v1526_v2 }
 0x492   : > { %2192 = vmatpush.msrb.mxu3 %v1689_v4  ;;  %v3049_v9 = vpop.permute.xlu0 %3048 }
 0x493   : > { %v3044_v61 = vpop.permute.xlu1 %3043  ;;  %v3050_v62 = vunpack.i.l.bf16 %v3049_v9  ;;  %v3051_v28 = vunpack.i.h.bf16 %v3049_v9 }
 0x494   : > { %v3045_v46 = vunpack.i.l.bf16 %v3044_v61  ;;  %2193 = vmatpush.msrb.mxu3 %v1635_v53  ;;  %v3046_v39 = vunpack.i.h.bf16 %v3044_v61 }
 0x495   : > { %v1417_v25 = vsel %vm4944_vm6, %v3050_v62, %v3030_v10  ;;  %v1419_v3 = vsel %vm4945_vm7, %v3031_v59, %v3051_v28  ;;  %v1416_v24 = vpop.permute.xlu2 %1415 }
 0x496   : > { %2194 = vmatpush.msrb.mxu3 %v1581_v35  ;;  %v1471_v47 = vsel %vm1057_vm0, %v3045_v46, %v3020_v34  ;;  %v1473_v1 = vsel %vm1057_vm0, %v3021_v21, %v3046_v39  ;;  %v4953_v21 = vld [vmem:[#allocation21_spill] sm:$0xff]  ;;  %v4954_v34 = vld [vmem:[#allocation19_spill] sm:$0xff] }
 0x497   : > { %2116 = vmatpush.msrb.mxu1 %v1471_v47 }
 0x498   : > { %2195 = vmatpush.msrb.mxu3 %v1528_v45 }
 0x499   : > { %2117 = vmatpush.msrb.mxu1 %v1417_v25 }
 0x49a   : > { %2630 = vmatmul.msk.f32.vlgmr.msrb.gmra.mxu1 %vm2078_vm1, %v4579_v27  ;;  %2196 = vmatpush.msrb.mxu3 %v1473_v1  ;;  %v1525_v11 = vpop.permute.xlu0 %1524 }
 0x49b   : > { %2162 = vmatpush.msra.mxu1 %v4346_v16  ;;  %v1632_v30 = vpop.permute.xlu1 %1631  ;;  %v1529_v16 = vsel %vm593_vm14, %v3041_v7, %v1525_v11 }
 0x49c   : > { %2197 = vmatpush.msrb.mxu3 %v1419_v3  ;;  %v1636_v13 = vsel %vm704_vm12, %v3026_v37, %v1632_v30  ;;  %v2440_v37 = vld [vmem:[%s4835_s10 + $0x10] sm:$0xff] }
 0x49d   : > { %2163 = vmatpush.msra.mxu1 %v4283_v58  ;;  %2233 = vmatpush.msra.mxu2 %v1636_v13 }
 0x49e   : > { %2632 = vmatmul.msk.f32.vlgmr.msrb.gmra.mxu3 %vm2078_vm1, %v4579_v27 }
 0x49f   : > { %2164 = vmatpush.msra.mxu1 %v3480_v43  ;;  %2234 = vmatpush.msra.mxu2 %v1582_v44  ;;  %v1420_v43 = vsel %vm4948_vm8, %v3051_v28, %v1416_v24 }
 0x4a1   : > { %2165 = vmatpush.msra.mxu1 %v4245_v18  ;;  %2235 = vmatpush.msra.mxu2 %v1529_v16  ;;  %v4950_v18 = vld [vmem:[#allocation26_spill] sm:$0xff] }
 0x4a2   : > { %v2246_v17 = vpop.permute.xlu0 %2245 }
 0x4a3   : > { %2166 = vmatpush.msra.mxu1 %v4946_v33  ;;  %v1470_v58 = vpop.permute.xlu1 %1469  ;;  %v3055_v33 = vld [vmem:[%s3343_s13 + $0x28] sm:$0xff] }
 0x4a4   : > { %v1474_v42 = vsel %vm1057_vm0, %v3046_v39, %v1470_v58 }
 0x4a5   : > { %2167 = vmatpush.msra.mxu1 %v4947_v14  ;;  %2236 = vmatpush.msra.mxu2 %v1474_v42 }
 0x4a7   : > { %2168 = vmatpush.msra.mxu1 %v4949_v36  ;;  %2237 = vmatpush.msra.mxu2 %v1420_v43 }
 0x4a8   : > { %2633 = vmatmul.msk.f32.vlgmr.msra.gmra.mxu2 %vm2078_vm1, %v4579_v27  ;;  %v2266_v27 = vld [vmem:[%s4829_s4] sm:$0xff] }
 0x4a9   : > { %2169 = vmatpush.msra.mxu1 %v4950_v18 }
 0x4aa   : > { %v4707_v35 = vpop.permute.xlu0 %2409 }
 0x4ab   : > { %2170 = vmatpush.msra.mxu1 %v4951_v12 }
 0x4ad   : > { %2171 = vmatpush.msra.mxu1 %v4952_v60  ;;  %v3056_v60 = vld [vmem:[%s3343_s13 + $0x48] sm:$0xff] }
 0x4af   : > { %2172 = vmatpush.msra.mxu1 %v4953_v21 }
 0x4b1   : > { %2173 = vmatpush.msra.mxu1 %v4954_v34 }
 0x4b2   : > { %v4714_v1 = vpop.permute.xlu0 %2444 }
 0x4b3   : > { %2174 = vmatpush.msra.mxu1 %v4955_v23 }
 0x4b5   : > { %2175 = vmatpush.msra.mxu1 %v4956_v6  ;;  %v3057_v6 = vld [vmem:[%s3343_s13] sm:$0xff] }
 0x4b7   : > { %2176 = vmatpush.msra.mxu1 %v4957_v32 }
 0x4b9   : > { %2177 = vmatpush.msra.mxu1 %v4958_v15 }
 0x4ba   : > { %2178 = vmatmul.f32.vlgmr.msra.gmra.mxu1 %v4515_v57  ;;  %v2398_v57 = vld [vmem:[%s4834_s9] sm:$0xff] }
 0x4bb   : > { %2404 = vperm.xlu2 %3053, %v2398_v57  }
 0x4c3   : > { %2419 = vperm.xlu2 %3053, %v2401_v50   ;;  %v3060_v50 = vld [vmem:[%s3343_s13 + $0x18] sm:$0xff] }
 0x4cb   : > { %2454 = vperm.xlu2 %3053, %v2440_v37  }
 0x4d2   : > { %v2139_v40 = vpop.f32.mrf.mxu2  ;;  %v2099_v55 = vpop.f32.mrf.mxu0 }
 0x4df   : > { %v2256_v59 = vpop.permute.xlu1 %2255 }
 0x4e7   : > { %v4711_v28 = vpop.permute.xlu1 %2414 }
 0x4f9   : > { %v4726_v16 = vpop.permute.xlu1 %2449 }
 0x502   : > { %v2219_v51 = vpop.f32.mrf.mxu0 }
 0x50a   : > { %v2159_v38 = vpop.f32.mrf.mxu3 }
 0x50b   : > { %v2160_v8 = vadd.f32 %v2159_v38, %v2139_v40  ;;  %v4741_v38 = vpop.permute.xlu0 %2459 }
 0x50d   : > { %v2249_v10 = vmul.f32 %v2246_v17, %v2160_v8 }
 0x50f   : > { %v2259_v19 = vadd.f32 %v2256_v59, %v2249_v10 }
 0x511   : > { %v2263_v49 = vmax.f32 %v2259_v19, 0.0  ;;  %v3058_v19 = vld [vmem:[%s3343_s13 + $0x68] sm:$0xff] }
 0x513   : > { %2326 = vmatpush.msrb.mxu1 %v2263_v49 }
 0x514   : > { %2638 = vmatmul.msk.f32.vlgmr.msrb.gmra.mxu1 %vm1141_vm3, %v2266_v27 }
 0x515   : > { %v4709_v47 = vpop.permute.xlu2 %2404 }
 0x517   : > { %v2119_v20 = vpop.f32.mrf.mxu1 }
 0x518   : > { %v2120_v52 = vadd.f32 %v2119_v20, %v2099_v55  ;;  %v3059_v20 = vld [vmem:[%s3343_s13 + $0x20] sm:$0xff] }
 0x51a   : > { %v2248_v31 = vmul.f32 %v2246_v17, %v2120_v52 }
 0x51c   : > { %v2258_v0 = vadd.f32 %v2256_v59, %v2248_v31  ;;  %2639 = vmatmul.msk.f32.gmra.mxu1 %vm1141_vm3, %v2267_v54 }
 0x51d   : > { %v4718_v3 = vpop.permute.xlu2 %2419 }
 0x51e   : > { %v2262_v48 = vmax.f32 %v2258_v0, 0.0 }
 0x520   : > { %2297 = vmatpush.msra.mxu3 %v2262_v48 }
 0x521   : > { %2634 = vmatmul.msk.f32.vlgmr.msra.gmra.mxu3 %vm1141_vm3, %v2266_v27  ;;  %v2199_v7 = vpop.f32.mrf.mxu3 }
 0x524   : > { %2640 = vmatmul.msk.f32.gmra.mxu1 %vm1141_vm3, %v2268_v41 }
 0x525   : > { %v4730_v14 = vpop.permute.xlu2 %2454 }
 0x529   : > { %2635 = vmatmul.msk.f32.gmra.mxu3 %vm1141_vm3, %v2267_v54 }
 0x52b   : > { %v2239_v56 = vpop.f32.mrf.mxu2 }
 0x52c   : > { %v2240_v2 = vadd.f32 %v2239_v56, %v2219_v51  ;;  %2641 = vmatmul.msk.f32.gmra.mxu1 %vm1141_vm3, %v2269_v26  ;;  %v3061_v56 = vld [vmem:[%s3343_s13 + $0x40] sm:$0xff] }
 0x52e   : > { %v2251_v29 = vmul.f32 %v2246_v17, %v2240_v2 }
 0x530   : > { %v2261_v4 = vadd.f32 %v2256_v59, %v2251_v29 }
 0x531   : > { %2636 = vmatmul.msk.f32.gmra.mxu3 %vm1141_vm3, %v2268_v41 }
 0x532   : > { %v2265_v9 = vmax.f32 %v2261_v4, 0.0 }
 0x534   : > { %2384 = vmatpush.msra.mxu0 %v2265_v9 }
 0x535   : > { %2646 = vmatmul.msk.f32.vlgmr.msra.gmra.mxu0 %vm1141_vm3, %v2266_v27 }
 0x537   : > { %v2179_v61 = vpop.f32.mrf.mxu1 }
 0x538   : > { %v2200_v53 = vadd.f32 %v2199_v7, %v2179_v61 }
 0x539   : > { %2637 = vmatmul.msk.f32.gmra.mxu3 %vm1141_vm3, %v2269_v26 }
 0x53a   : > { %v2250_v62 = vmul.f32 %v2246_v17, %v2200_v53 }
 0x53c   : > { %v2260_v46 = vadd.f32 %v2256_v59, %v2250_v62  ;;  %v3062_v62 = vld [vmem:[%s3343_s13 + $0x38] sm:$0xff] }
 0x53d   : > { %2647 = vmatmul.msk.f32.gmra.mxu0 %vm1141_vm3, %v2267_v54 }
 0x53e   : > { %v2264_v39 = vmax.f32 %v2260_v46, 0.0 }
 0x540   : > { %2355 = vmatpush.msrb.mxu2 %v2264_v39 }
 0x541   : > { %2642 = vmatmul.msk.f32.vlgmr.msrb.gmra.mxu2 %vm1141_vm3, %v2266_v27 }
 0x545   : > { %2648 = vmatmul.msk.f32.gmra.mxu0 %vm1141_vm3, %v2268_v41 }
 0x549   : > { %2643 = vmatmul.msk.f32.gmra.mxu2 %vm1141_vm3, %v2267_v54 }
 0x54d   : > { %2649 = vmatmul.msk.f32.gmra.mxu0 %vm1141_vm3, %v2269_v26 }
 0x551   : > { %2644 = vmatmul.msk.f32.gmra.mxu2 %vm1141_vm3, %v2268_v41 }
 0x559   : > { %2645 = vmatmul.msk.f32.gmra.mxu2 %vm1141_vm3, %v2269_v26 }
 0x591   : > { %v2328_v45 = vpop.f32.mrf.mxu1 }
 0x592   : > { %v2423_v25 = vmul.f32 %v4709_v47, %v2328_v45 }
 0x594   : > { %v2463_v22 = vadd.f32 %v4714_v1, %v2423_v25  ;;  %v3063_v25 = vld [vmem:[%s3343_s13 + $0x60] sm:$0xff] }
 0x596   : > { %v2479_v30 = vadd.f32 %v3054_v5, %v2463_v22 }
 0x598   : > { %v2495_v13 = vmax.f32 %v2479_v30, 0.0 }
 0x599   : > { %v2331_v11 = vpop.f32.mrf.mxu1 }
 0x59a   : > { %2511 = vst [vmem:[%s4722_s16 + $0x8] sm:$0xff] %v2495_v13  ;;  %v2427_v44 = vmul.f32 %v4707_v35, %v2331_v11 }
 0x59c   : > { %v2467_v63 = vadd.f32 %v4726_v16, %v2427_v44 }
 0x59e   : > { %v2483_v58 = vadd.f32 %v3055_v33, %v2467_v63  ;;  %v3064_v33 = vld [vmem:[%s3343_s13 + $0x58] sm:$0xff] }
 0x5a0   : > { %v2499_v42 = vmax.f32 %v2483_v58, 0.0 }
 0x5a1   : > { %v2334_v24 = vpop.f32.mrf.mxu1 }
 0x5a2   : > { %2515 = vst [vmem:[%s4722_s16 + $0x28] sm:$0xff] %v2499_v42  ;;  %v2431_v43 = vmul.f32 %v4711_v28, %v2334_v24 }
 0x5a4   : > { %v2471_v36 = vadd.f32 %v4730_v14, %v2431_v43  ;;  %v2299_v18 = vpop.f32.mrf.mxu3  ;;  %v3065_v43 = vld [vmem:[%s3343_s13 + $0x10] sm:$0xff] }
 0x5a5   : > { %v2422_v12 = vmul.f32 %v4709_v47, %v2299_v18 }
 0x5a6   : > { %v2487_v21 = vadd.f32 %v3056_v60, %v2471_v36 }
 0x5a7   : > { %v2462_v34 = vadd.f32 %v4714_v1, %v2422_v12 }
 0x5a8   : > { %v2503_v23 = vmax.f32 %v2487_v21, 0.0 }
 0x5a9   : > { %v2478_v32 = vadd.f32 %v3057_v6, %v2462_v34  ;;  %v2337_v15 = vpop.f32.mrf.mxu1 }
 0x5aa   : > { %2519 = vst [vmem:[%s4722_s16 + $0x48] sm:$0xff] %v2503_v23  ;;  %v2435_v40 = vmul.f32 %v4718_v3, %v2337_v15  ;;  %v3067_v15 = vld [vmem:[%s3343_s13 + $0x30] sm:$0xff] }
 0x5ab   : > { %v2494_v8 = vmax.f32 %v2478_v32, 0.0 }
 0x5ac   : > { %v2475_v17 = vadd.f32 %v4741_v38, %v2435_v40  ;;  %v2302_v59 = vpop.f32.mrf.mxu3 }
 0x5ad   : > { %2510 = vst [vmem:[%s4722_s16] sm:$0xff] %v2494_v8  ;;  %v2426_v10 = vmul.f32 %v4707_v35, %v2302_v59 }
 0x5ae   : > { %v2491_v49 = vadd.f32 %v3058_v19, %v2475_v17  ;;  %v3068_v19 = vld [vmem:[%s3343_s13 + $0x50] sm:$0xff] }
 0x5af   : > { %v2466_v27 = vadd.f32 %v4726_v16, %v2426_v10 }
 0x5b0   : > { %v2507_v55 = vmax.f32 %v2491_v49, 0.0 }
 0x5b1   : > { %v2482_v52 = vadd.f32 %v3059_v20, %v2466_v27 }
 0x5b2   : > { %2523 = vst [vmem:[%s4722_s16 + $0x68] sm:$0xff] %v2507_v55  ;;  %v2386_v57 = vpop.f32.mrf.mxu0 }
 0x5b3   : > { %v2498_v54 = vmax.f32 %v2482_v52, 0.0  ;;  %v2425_v31 = vmul.f32 %v4709_v47, %v2386_v57 }
 0x5b4   : > { %v2305_v0 = vpop.f32.mrf.mxu3 }
 0x5b5   : > { %2514 = vst [vmem:[%s4722_s16 + $0x20] sm:$0xff] %v2498_v54  ;;  %v2465_v48 = vadd.f32 %v4714_v1, %v2425_v31  ;;  %v2430_v41 = vmul.f32 %v4711_v28, %v2305_v0 }
 0x5b7   : > { %v2481_v51 = vadd.f32 %v3060_v50, %v2465_v48  ;;  %v2470_v26 = vadd.f32 %v4730_v14, %v2430_v41 }
 0x5b9   : > { %v2497_v37 = vmax.f32 %v2481_v51, 0.0  ;;  %v2486_v2 = vadd.f32 %v3061_v56, %v2470_v26 }
 0x5ba   : > { %v2389_v29 = vpop.f32.mrf.mxu0 }
 0x5bb   : > { %2513 = vst [vmem:[%s4722_s16 + $0x18] sm:$0xff] %v2497_v37  ;;  %v2502_v4 = vmax.f32 %v2486_v2, 0.0  ;;  %v2429_v9 = vmul.f32 %v4707_v35, %v2389_v29 }
 0x5bc   : > { %v2308_v7 = vpop.f32.mrf.mxu3 }
 0x5bd   : > { %2518 = vst [vmem:[%s4722_s16 + $0x40] sm:$0xff] %v2502_v4  ;;  %v2469_v61 = vadd.f32 %v4726_v16, %v2429_v9  ;;  %v2434_v53 = vmul.f32 %v4718_v3, %v2308_v7 }
 0x5bf   : > { %v2485_v46 = vadd.f32 %v3062_v62, %v2469_v61  ;;  %v2474_v39 = vadd.f32 %v4741_v38, %v2434_v53 }
 0x5c1   : > { %v2501_v45 = vmax.f32 %v2485_v46, 0.0  ;;  %v2490_v22 = vadd.f32 %v3063_v25, %v2474_v39 }
 0x5c2   : > { %v2392_v5 = vpop.f32.mrf.mxu0 }
 0x5c3   : > { %2517 = vst [vmem:[%s4722_s16 + $0x38] sm:$0xff] %v2501_v45  ;;  %v2506_v30 = vmax.f32 %v2490_v22, 0.0  ;;  %v2433_v13 = vmul.f32 %v4711_v28, %v2392_v5 }
 0x5c4   : > { %v2357_v11 = vpop.f32.mrf.mxu2 }
 0x5c5   : > { %2522 = vst [vmem:[%s4722_s16 + $0x60] sm:$0xff] %v2506_v30  ;;  %v2473_v44 = vadd.f32 %v4730_v14, %v2433_v13  ;;  %v2424_v63 = vmul.f32 %v4709_v47, %v2357_v11 }
 0x5c7   : > { %v2489_v58 = vadd.f32 %v3064_v33, %v2473_v44  ;;  %v2464_v42 = vadd.f32 %v4714_v1, %v2424_v63  ;;  %v3066_v1 = vld [vmem:[%s3343_s13 + $0x78] sm:$0xff] }
 0x5c9   : > { %v2505_v24 = vmax.f32 %v2489_v58, 0.0  ;;  %v2480_v36 = vadd.f32 %v3065_v43, %v2464_v42 }
 0x5ca   : > { %v2395_v18 = vpop.f32.mrf.mxu0 }
 0x5cb   : > { %2521 = vst [vmem:[%s4722_s16 + $0x58] sm:$0xff] %v2505_v24  ;;  %v2496_v12 = vmax.f32 %v2480_v36, 0.0  ;;  %v2437_v60 = vmul.f32 %v4718_v3, %v2395_v18 }
 0x5cc   : > { %v2360_v21 = vpop.f32.mrf.mxu2 }
 0x5cd   : > { %2512 = vst [vmem:[%s4722_s16 + $0x10] sm:$0xff] %v2496_v12  ;;  %v2477_v47 = vadd.f32 %v4741_v38, %v2437_v60  ;;  %v2428_v34 = vmul.f32 %v4707_v35, %v2360_v21 }
 0x5cf   : > { %v2493_v23 = vadd.f32 %v3066_v1, %v2477_v47  ;;  %v2468_v6 = vadd.f32 %v4726_v16, %v2428_v34 }
 0x5d1   : > { %v2509_v32 = vmax.f32 %v2493_v23, 0.0  ;;  %v2484_v40 = vadd.f32 %v3067_v15, %v2468_v6 }
 0x5d3   : > { %2525 = vst [vmem:[%s4722_s16 + $0x78] sm:$0xff] %v2509_v32  ;;  %v2500_v8 = vmax.f32 %v2484_v40, 0.0 }
 0x5d4   : > { %v2363_v17 = vpop.f32.mrf.mxu2 }
 0x5d5   : > { %2516 = vst [vmem:[%s4722_s16 + $0x30] sm:$0xff] %v2500_v8  ;;  %v2432_v59 = vmul.f32 %v4711_v28, %v2363_v17  ;;  %v3069_v28 = vld [vmem:[%s3343_s13 + $0x70] sm:$0xff] }
 0x5d7   : > { %v2472_v10 = vadd.f32 %v4730_v14, %v2432_v59 }
 0x5d9   : > { %v2488_v35 = vadd.f32 %v3068_v19, %v2472_v10 }
 0x5db   : > { %v2504_v16 = vmax.f32 %v2488_v35, 0.0 }
 0x5dc   : > { %v2366_v49 = vpop.f32.mrf.mxu2 }
 0x5dd   : > { %2520 = vst [vmem:[%s4722_s16 + $0x50] sm:$0xff] %v2504_v16  ;;  %v2436_v27 = vmul.f32 %v4718_v3, %v2366_v49 }
 0x5df   : > { %v2476_v55 = vadd.f32 %v4741_v38, %v2436_v27 }
 0x5e1   : > { %v2492_v14 = vadd.f32 %v3069_v28, %v2476_v55 }
 0x5e3   : > { %v2508_v20 = vmax.f32 %v2492_v14, 0.0 }
 0x5e5   : > { %2524 = vst [vmem:[%s4722_s16 + $0x70] sm:$0xff] %v2508_v20 }
 0x5e6   : > { %3127 = shalt.err (!%p3124_p4)
}
 0x5e7   : > { %s3189_s22 = smov 512   ;;  %s3190_s13 = smov 32  }
 0x5e8   : > { %2659 = dma.vmem_to_hbm [thread:$0]  (%p3301_p11), %s2540_s19, 2048, %s2542_s23, %s2527_s21, %s3189_s22, %s3189_s22, %s3190_s13  }
 0x5e9 PF: > { %s4960_s16 = sld [smem:[#allocation9_spill]]  ;;  %p4962_p7 = scmp.ge.s32.totalorder %s3166_s20, 2 }
 0x5eb   : > { %p2666_p5 = pnand %p4962_p7, %p3305_p12 }
 0x5ed   : > { %p2667_p8 = pneg %p2666_p5 }
 0x5ef   : > { %s2556_s24 = sand.u32 1, %s4960_s16  }
 0x5f0   : > { %s2557_s17 = scalar_lea.sflag [#allocation5], %s2556_s24 }
 0x5f1   : > { %3149 = dma.done.wait (%p2667_p8), %s2557_s17, 2048  }
 0x5f2   : > { %3151 = vsyncadd (%p2667_p8), %s2557_s17, 4294965248  ;;  %s4963_s20 = sld [smem:[#allocation11_spill]]  ;;  %s4966_s17 = smov %s3158_s18 }
 0x5f3   : > { %s4964_s26 = sld [smem:[#allocation10_spill]] }
 0x5f4   : > { %s4965_s19 = sld [smem:[#allocation12_spill]] }
 0x5f8   : > { %p24_p10 = scmp.ge.s32.totalorder %s4963_s20, 4  }
 0x5f9   : > { %s4967_s18 = smov %s4964_s26 }
 0x5fa   :  { %26 = sbr.rel (!%p24_p10) target bundleno = 5 (0x5), region = 111 }
 0x5ff   :  { %2563 = vsyncpa [#allocation4], 1 }
 0x600   :  { %2565 = vsyncpa [#allocation4 + $0x1], 1 }
 0x601   :  { %2566 = vsyncpa [#allocation5], 1 }
 0x602   :  { %2568 = vsyncpa [#allocation5 + $0x1], 1 }

</bundles_post_ra>
